<compile_context>
chip_gen: v7x
topology: tpu7x:2x2x1
jax: 0.10.0
libtpu: 0.0.40
codegen_flags: <defaults>
</compile_context>

<pallas_src>
import functools

import jax
import jax.numpy as jnp
from jax.experimental import pallas as pl
from jax.experimental.pallas import tpu as pltpu

_H_STRIP = 8  # one sublane group per strip -> ~TB/128 live vregs per strip


def _critic_kernel(xT_ref, w1T_ref, bw_ref, b2_ref, o_ref):
    # xT : (S, TB)   lane-dense batch tile
    # w1T: (H, S)    first-layer weights, transposed (resident)
    # bw : (H, 2)    column 0 = b1, column 1 = w2 (packed)
    # b2 : (1, 1)    scalar in SMEM
    # o  : (1, TB)   lane-dense value row
    xT = xT_ref[...]
    S, TB = xT.shape
    H = w1T_ref.shape[0]

    # Per-sublane partial sums of w2 * relu(h); one XLU reduce at the very end.
    acc = jnp.zeros((_H_STRIP, TB), jnp.float32)
    for h0 in range(0, H, _H_STRIP):           # H small & static -> unrolled
        w1s = w1T_ref[h0:h0 + _H_STRIP, :]     # (8, S)  sublane-aligned slice
        b1s = bw_ref[h0:h0 + _H_STRIP, 0:1]    # (8, 1)
        w2s = bw_ref[h0:h0 + _H_STRIP, 1:2]    # (8, 1)
        hs = b1s + w1s[:, 0:1] * xT[0:1, :]    # (8,1)*(1,TB) -> (8,TB) on VPU
        for k in range(1, S):                  # S is tiny & static -> unrolled
            hs = hs + w1s[:, k:k + 1] * xT[k:k + 1, :]
        hs = jnp.maximum(hs, 0.0)              # ReLU
        acc = acc + hs * w2s                   # fold layer-2 weights per strip
    v = jnp.sum(acc, axis=0, keepdims=True) + b2_ref[0, 0]   # XLU sublane reduce
    o_ref[...] = v.astype(o_ref.dtype)         # full-width (1, TB) store


def _round_up(x, m):
    return ((x + m - 1) // m) * m


@functools.partial(jax.jit, static_argnames=("max_tile_b",))
def critic_forward(state, w1, b1, w2, b2, *, max_tile_b=1024):
    """state: (B, state_dim) f32 -> value: (B, 1) f32  (== relu(x@W1+b1)@W2+b2)."""
    B, S = state.shape
    H = w1.shape[1]
    # The layer-1 FMA chain is fully unrolled over state_dim on the VPU; this
    # kernel assumes a small observation space (CartPole: 4).
    assert S <= 32, "critic_forward assumes a small state_dim (use MXU path otherwise)"
    assert H % _H_STRIP == 0, "hidden dim must be a multiple of the 8-sublane strip"

    # Lane-dense layout plumbing: only a transpose (no padded HBM copy).
    # Single grid step for B <= 1024; ragged final block handled by Pallas.
    tile_b = min(max_tile_b, _round_up(B, 128))
    grid_b = pl.cdiv(B, tile_b)

    xT = state.T                                                   # (S, B)
    w1T = w1.T                                                     # (H, S)
    bw = jnp.concatenate(
        [jnp.reshape(b1, (H, 1)), jnp.reshape(w2, (H, 1))], axis=1)  # (H, 2)
    b2s = jnp.reshape(b2, (1, 1))

    cost = pl.CostEstimate(
        flops=2 * B * H * (S + 1),
        transcendentals=0,
        bytes_accessed=4 * (S * B + H * S + 2 * H + 1 + B),
    )

    out = pl.pallas_call(
        _critic_kernel,
        out_shape=jax.ShapeDtypeStruct((1, B), jnp.float32),
        grid=(grid_b,),
        in_specs=[
            pl.BlockSpec((S, tile_b), lambda i: (0, i)),          # x^T batch tile
            pl.BlockSpec((H, S), lambda i: (0, 0)),               # W1^T (resident)
            pl.BlockSpec((H, 2), lambda i: (0, 0)),               # [b1 | w2] packed
            pl.BlockSpec(memory_space=pltpu.MemorySpace.SMEM),    # b2 scalar
        ],
        out_specs=pl.BlockSpec((1, tile_b), lambda i: (0, i)),    # lane-dense values
        compiler_params=pltpu.CompilerParams(
            dimension_semantics=("parallel",),
        ),
        cost_estimate=cost,
    )(xT, w1T, bw, b2s)

    return out[0, :].reshape(B, 1)


def init_critic_params(key, state_dim, hidden=128):
    """Deterministic init mimicking torch.nn.Linear defaults (uniform +/-1/sqrt(fan_in))."""
    k1, k2, k3, k4 = jax.random.split(key, 4)
    bound1 = 1.0 / jnp.sqrt(state_dim)
    bound2 = 1.0 / jnp.sqrt(hidden)
    w1 = jax.random.uniform(k1, (state_dim, hidden), jnp.float32, -bound1, bound1)
    b1 = jax.random.uniform(k2, (1, hidden), jnp.float32, -bound1, bound1)
    w2 = jax.random.uniform(k3, (hidden, 1), jnp.float32, -bound2, bound2)
    b2 = jax.random.uniform(k4, (1, 1), jnp.float32, -bound2, bound2)
    return w1, b1, w2, b2


if __name__ == "__main__":
    state_dim = 4      # CartPole-v1 observation_space.shape[0]
    hidden = 128

    key = jax.random.PRNGKey(0)
    k_params, k_s1, k_s2 = jax.random.split(key, 3)
    w1, b1, w2, b2 = init_critic_params(k_params, state_dim, hidden)

    def reference(x):
        return jnp.maximum(x @ w1 + b1, 0.0) @ w2 + b2

    # Small per-step batch (ragged, single grid step) and a rollout-sized batch
    # (still a single grid step with the 1024-lane tile).
    for batch, k in ((2, k_s1), (1000, k_s2)):
        state = jax.random.normal(k, (batch, state_dim), jnp.float32)
        out = jax.block_until_ready(critic_forward(state, w1, b1, w2, b2))
        ref = reference(state)
        assert out.shape == (batch, 1)
        assert jnp.allclose(out, ref, atol=1e-4, rtol=1e-4)

    print("KERNEL_OK")
</pallas_src>

<mosaic_0001>
module attributes {stable_mosaic.version = 11 : i64} {
  func.func @_critic_kernel(%arg0: i32, %arg1: memref<4x128xf32, #tpu.memory_space<vmem>>, %arg2: memref<128x4xf32, #tpu.memory_space<vmem>>, %arg3: memref<128x2xf32, #tpu.memory_space<vmem>>, %arg4: memref<1x1xf32, #tpu.memory_space<smem>>, %arg5: memref<1x128xf32, #tpu.memory_space<vmem>>) attributes {dimension_semantics = [#tpu.dimension_semantics<parallel>], iteration_bounds = array<i64: 1>, scalar_prefetch = 0 : i64, scratch_operands = 0 : i64, tpu.core_type = #tpu.core_type<tc>, window_params = [{transform_indices = @transform_0, window_bounds = array<i64: 4, 128>}, {pipeline_mode = #tpu.pipeline_mode<synchronous>, transform_indices = @transform_1, window_bounds = array<i64: 128, 4>}, {pipeline_mode = #tpu.pipeline_mode<synchronous>, transform_indices = @transform_2, window_bounds = array<i64: 128, 2>}, {transform_indices = @transform_3, window_bounds = array<i64: 1, 1>}, {transform_indices = @transform_4, window_bounds = array<i64: 1, 128>}]} {
    %c0 = arith.constant 0 : index
    %c0_0 = arith.constant 0 : index
    %0 = vector.load %arg1[%c0, %c0_0] : memref<4x128xf32, #tpu.memory_space<vmem>>, vector<4x128xf32>
    %cst = arith.constant 0.000000e+00 : f32
    %1 = vector.broadcast %cst : f32 to vector<8x128xf32>
    %c0_1 = arith.constant 0 : index
    %c0_2 = arith.constant 0 : index
    %2 = vector.load %arg2[%c0_1, %c0_2] : memref<128x4xf32, #tpu.memory_space<vmem>>, vector<8x4xf32>
    %c0_3 = arith.constant 0 : index
    %c0_4 = arith.constant 0 : index
    %3 = vector.load %arg3[%c0_3, %c0_4] : memref<128x2xf32, #tpu.memory_space<vmem>>, vector<8x1xf32>
    %c0_5 = arith.constant 0 : index
    %c1 = arith.constant 1 : index
    %4 = vector.load %arg3[%c0_5, %c1] : memref<128x2xf32, #tpu.memory_space<vmem>>, vector<8x1xf32>
    %5 = vector.extract_strided_slice %2 {offsets = [0, 0], sizes = [8, 1], strides = [1, 1]} : vector<8x4xf32> to vector<8x1xf32>
    %6 = vector.extract_strided_slice %0 {offsets = [0, 0], sizes = [1, 128], strides = [1, 1]} : vector<4x128xf32> to vector<1x128xf32>
    %7 = vector.broadcast %5 : vector<8x1xf32> to vector<8x128xf32>
    %8 = vector.broadcast %6 : vector<1x128xf32> to vector<8x128xf32>
    %9 = arith.mulf %7, %8 : vector<8x128xf32>
    %10 = vector.broadcast %3 : vector<8x1xf32> to vector<8x128xf32>
    %11 = arith.addf %10, %9 : vector<8x128xf32>
    %12 = vector.extract_strided_slice %2 {offsets = [0, 1], sizes = [8, 1], strides = [1, 1]} : vector<8x4xf32> to vector<8x1xf32>
    %13 = vector.extract_strided_slice %0 {offsets = [1, 0], sizes = [1, 128], strides = [1, 1]} : vector<4x128xf32> to vector<1x128xf32>
    %14 = vector.broadcast %12 : vector<8x1xf32> to vector<8x128xf32>
    %15 = vector.broadcast %13 : vector<1x128xf32> to vector<8x128xf32>
    %16 = arith.mulf %14, %15 : vector<8x128xf32>
    %17 = arith.addf %11, %16 : vector<8x128xf32>
    %18 = vector.extract_strided_slice %2 {offsets = [0, 2], sizes = [8, 1], strides = [1, 1]} : vector<8x4xf32> to vector<8x1xf32>
    %19 = vector.extract_strided_slice %0 {offsets = [2, 0], sizes = [1, 128], strides = [1, 1]} : vector<4x128xf32> to vector<1x128xf32>
    %20 = vector.broadcast %18 : vector<8x1xf32> to vector<8x128xf32>
    %21 = vector.broadcast %19 : vector<1x128xf32> to vector<8x128xf32>
    %22 = arith.mulf %20, %21 : vector<8x128xf32>
    %23 = arith.addf %17, %22 : vector<8x128xf32>
    %24 = vector.extract_strided_slice %2 {offsets = [0, 3], sizes = [8, 1], strides = [1, 1]} : vector<8x4xf32> to vector<8x1xf32>
    %25 = vector.extract_strided_slice %0 {offsets = [3, 0], sizes = [1, 128], strides = [1, 1]} : vector<4x128xf32> to vector<1x128xf32>
    %26 = vector.broadcast %24 : vector<8x1xf32> to vector<8x128xf32>
    %27 = vector.broadcast %25 : vector<1x128xf32> to vector<8x128xf32>
    %28 = arith.mulf %26, %27 : vector<8x128xf32>
    %29 = arith.addf %23, %28 : vector<8x128xf32>
    %cst_6 = arith.constant 0.000000e+00 : f32
    %30 = vector.broadcast %cst_6 : f32 to vector<8x128xf32>
    %31 = arith.maximumf %29, %30 : vector<8x128xf32>
    %32 = vector.broadcast %4 : vector<8x1xf32> to vector<8x128xf32>
    %33 = arith.mulf %31, %32 : vector<8x128xf32>
    %34 = arith.addf %1, %33 : vector<8x128xf32>
    %c8 = arith.constant 8 : index
    %c0_7 = arith.constant 0 : index
    %35 = vector.load %arg2[%c8, %c0_7] : memref<128x4xf32, #tpu.memory_space<vmem>>, vector<8x4xf32>
    %c8_8 = arith.constant 8 : index
    %c0_9 = arith.constant 0 : index
    %36 = vector.load %arg3[%c8_8, %c0_9] : memref<128x2xf32, #tpu.memory_space<vmem>>, vector<8x1xf32>
    %c8_10 = arith.constant 8 : index
    %c1_11 = arith.constant 1 : index
    %37 = vector.load %arg3[%c8_10, %c1_11] : memref<128x2xf32, #tpu.memory_space<vmem>>, vector<8x1xf32>
    %38 = vector.extract_strided_slice %35 {offsets = [0, 0], sizes = [8, 1], strides = [1, 1]} : vector<8x4xf32> to vector<8x1xf32>
    %39 = vector.extract_strided_slice %0 {offsets = [0, 0], sizes = [1, 128], strides = [1, 1]} : vector<4x128xf32> to vector<1x128xf32>
    %40 = vector.broadcast %38 : vector<8x1xf32> to vector<8x128xf32>
    %41 = vector.broadcast %39 : vector<1x128xf32> to vector<8x128xf32>
    %42 = arith.mulf %40, %41 : vector<8x128xf32>
    %43 = vector.broadcast %36 : vector<8x1xf32> to vector<8x128xf32>
    %44 = arith.addf %43, %42 : vector<8x128xf32>
    %45 = vector.extract_strided_slice %35 {offsets = [0, 1], sizes = [8, 1], strides = [1, 1]} : vector<8x4xf32> to vector<8x1xf32>
    %46 = vector.extract_strided_slice %0 {offsets = [1, 0], sizes = [1, 128], strides = [1, 1]} : vector<4x128xf32> to vector<1x128xf32>
    %47 = vector.broadcast %45 : vector<8x1xf32> to vector<8x128xf32>
    %48 = vector.broadcast %46 : vector<1x128xf32> to vector<8x128xf32>
    %49 = arith.mulf %47, %48 : vector<8x128xf32>
    %50 = arith.addf %44, %49 : vector<8x128xf32>
    %51 = vector.extract_strided_slice %35 {offsets = [0, 2], sizes = [8, 1], strides = [1, 1]} : vector<8x4xf32> to vector<8x1xf32>
    %52 = vector.extract_strided_slice %0 {offsets = [2, 0], sizes = [1, 128], strides = [1, 1]} : vector<4x128xf32> to vector<1x128xf32>
    %53 = vector.broadcast %51 : vector<8x1xf32> to vector<8x128xf32>
    %54 = vector.broadcast %52 : vector<1x128xf32> to vector<8x128xf32>
    %55 = arith.mulf %53, %54 : vector<8x128xf32>
    %56 = arith.addf %50, %55 : vector<8x128xf32>
    %57 = vector.extract_strided_slice %35 {offsets = [0, 3], sizes = [8, 1], strides = [1, 1]} : vector<8x4xf32> to vector<8x1xf32>
    %58 = vector.extract_strided_slice %0 {offsets = [3, 0], sizes = [1, 128], strides = [1, 1]} : vector<4x128xf32> to vector<1x128xf32>
    %59 = vector.broadcast %57 : vector<8x1xf32> to vector<8x128xf32>
    %60 = vector.broadcast %58 : vector<1x128xf32> to vector<8x128xf32>
    %61 = arith.mulf %59, %60 : vector<8x128xf32>
    %62 = arith.addf %56, %61 : vector<8x128xf32>
    %cst_12 = arith.constant 0.000000e+00 : f32
    %63 = vector.broadcast %cst_12 : f32 to vector<8x128xf32>
    %64 = arith.maximumf %62, %63 : vector<8x128xf32>
    %65 = vector.broadcast %37 : vector<8x1xf32> to vector<8x128xf32>
    %66 = arith.mulf %64, %65 : vector<8x128xf32>
    %67 = arith.addf %34, %66 : vector<8x128xf32>
    %c16 = arith.constant 16 : index
    %c0_13 = arith.constant 0 : index
    %68 = vector.load %arg2[%c16, %c0_13] : memref<128x4xf32, #tpu.memory_space<vmem>>, vector<8x4xf32>
    %c16_14 = arith.constant 16 : index
    %c0_15 = arith.constant 0 : index
    %69 = vector.load %arg3[%c16_14, %c0_15] : memref<128x2xf32, #tpu.memory_space<vmem>>, vector<8x1xf32>
    %c16_16 = arith.constant 16 : index
    %c1_17 = arith.constant 1 : index
    %70 = vector.load %arg3[%c16_16, %c1_17] : memref<128x2xf32, #tpu.memory_space<vmem>>, vector<8x1xf32>
    %71 = vector.extract_strided_slice %68 {offsets = [0, 0], sizes = [8, 1], strides = [1, 1]} : vector<8x4xf32> to vector<8x1xf32>
    %72 = vector.extract_strided_slice %0 {offsets = [0, 0], sizes = [1, 128], strides = [1, 1]} : vector<4x128xf32> to vector<1x128xf32>
    %73 = vector.broadcast %71 : vector<8x1xf32> to vector<8x128xf32>
    %74 = vector.broadcast %72 : vector<1x128xf32> to vector<8x128xf32>
    %75 = arith.mulf %73, %74 : vector<8x128xf32>
    %76 = vector.broadcast %69 : vector<8x1xf32> to vector<8x128xf32>
    %77 = arith.addf %76, %75 : vector<8x128xf32>
    %78 = vector.extract_strided_slice %68 {offsets = [0, 1], sizes = [8, 1], strides = [1, 1]} : vector<8x4xf32> to vector<8x1xf32>
    %79 = vector.extract_strided_slice %0 {offsets = [1, 0], sizes = [1, 128], strides = [1, 1]} : vector<4x128xf32> to vector<1x128xf32>
    %80 = vector.broadcast %78 : vector<8x1xf32> to vector<8x128xf32>
    %81 = vector.broadcast %79 : vector<1x128xf32> to vector<8x128xf32>
    %82 = arith.mulf %80, %81 : vector<8x128xf32>
    %83 = arith.addf %77, %82 : vector<8x128xf32>
    %84 = vector.extract_strided_slice %68 {offsets = [0, 2], sizes = [8, 1], strides = [1, 1]} : vector<8x4xf32> to vector<8x1xf32>
    %85 = vector.extract_strided_slice %0 {offsets = [2, 0], sizes = [1, 128], strides = [1, 1]} : vector<4x128xf32> to vector<1x128xf32>
    %86 = vector.broadcast %84 : vector<8x1xf32> to vector<8x128xf32>
    %87 = vector.broadcast %85 : vector<1x128xf32> to vector<8x128xf32>
    %88 = arith.mulf %86, %87 : vector<8x128xf32>
    %89 = arith.addf %83, %88 : vector<8x128xf32>
    %90 = vector.extract_strided_slice %68 {offsets = [0, 3], sizes = [8, 1], strides = [1, 1]} : vector<8x4xf32> to vector<8x1xf32>
    %91 = vector.extract_strided_slice %0 {offsets = [3, 0], sizes = [1, 128], strides = [1, 1]} : vector<4x128xf32> to vector<1x128xf32>
    %92 = vector.broadcast %90 : vector<8x1xf32> to vector<8x128xf32>
    %93 = vector.broadcast %91 : vector<1x128xf32> to vector<8x128xf32>
    %94 = arith.mulf %92, %93 : vector<8x128xf32>
    %95 = arith.addf %89, %94 : vector<8x128xf32>
    %cst_18 = arith.constant 0.000000e+00 : f32
    %96 = vector.broadcast %cst_18 : f32 to vector<8x128xf32>
    %97 = arith.maximumf %95, %96 : vector<8x128xf32>
    %98 = vector.broadcast %70 : vector<8x1xf32> to vector<8x128xf32>
    %99 = arith.mulf %97, %98 : vector<8x128xf32>
    %100 = arith.addf %67, %99 : vector<8x128xf32>
    %c24 = arith.constant 24 : index
    %c0_19 = arith.constant 0 : index
    %101 = vector.load %arg2[%c24, %c0_19] : memref<128x4xf32, #tpu.memory_space<vmem>>, vector<8x4xf32>
    %c24_20 = arith.constant 24 : index
    %c0_21 = arith.constant 0 : index
    %102 = vector.load %arg3[%c24_20, %c0_21] : memref<128x2xf32, #tpu.memory_space<vmem>>, vector<8x1xf32>
    %c24_22 = arith.constant 24 : index
    %c1_23 = arith.constant 1 : index
    %103 = vector.load %arg3[%c24_22, %c1_23] : memref<128x2xf32, #tpu.memory_space<vmem>>, vector<8x1xf32>
    %104 = vector.extract_strided_slice %101 {offsets = [0, 0], sizes = [8, 1], strides = [1, 1]} : vector<8x4xf32> to vector<8x1xf32>
    %105 = vector.extract_strided_slice %0 {offsets = [0, 0], sizes = [1, 128], strides = [1, 1]} : vector<4x128xf32> to vector<1x128xf32>
    %106 = vector.broadcast %104 : vector<8x1xf32> to vector<8x128xf32>
    %107 = vector.broadcast %105 : vector<1x128xf32> to vector<8x128xf32>
    %108 = arith.mulf %106, %107 : vector<8x128xf32>
    %109 = vector.broadcast %102 : vector<8x1xf32> to vector<8x128xf32>
    %110 = arith.addf %109, %108 : vector<8x128xf32>
    %111 = vector.extract_strided_slice %101 {offsets = [0, 1], sizes = [8, 1], strides = [1, 1]} : vector<8x4xf32> to vector<8x1xf32>
    %112 = vector.extract_strided_slice %0 {offsets = [1, 0], sizes = [1, 128], strides = [1, 1]} : vector<4x128xf32> to vector<1x128xf32>
    %113 = vector.broadcast %111 : vector<8x1xf32> to vector<8x128xf32>
    %114 = vector.broadcast %112 : vector<1x128xf32> to vector<8x128xf32>
    %115 = arith.mulf %113, %114 : vector<8x128xf32>
    %116 = arith.addf %110, %115 : vector<8x128xf32>
    %117 = vector.extract_strided_slice %101 {offsets = [0, 2], sizes = [8, 1], strides = [1, 1]} : vector<8x4xf32> to vector<8x1xf32>
    %118 = vector.extract_strided_slice %0 {offsets = [2, 0], sizes = [1, 128], strides = [1, 1]} : vector<4x128xf32> to vector<1x128xf32>
    %119 = vector.broadcast %117 : vector<8x1xf32> to vector<8x128xf32>
    %120 = vector.broadcast %118 : vector<1x128xf32> to vector<8x128xf32>
    %121 = arith.mulf %119, %120 : vector<8x128xf32>
    %122 = arith.addf %116, %121 : vector<8x128xf32>
    %123 = vector.extract_strided_slice %101 {offsets = [0, 3], sizes = [8, 1], strides = [1, 1]} : vector<8x4xf32> to vector<8x1xf32>
    %124 = vector.extract_strided_slice %0 {offsets = [3, 0], sizes = [1, 128], strides = [1, 1]} : vector<4x128xf32> to vector<1x128xf32>
    %125 = vector.broadcast %123 : vector<8x1xf32> to vector<8x128xf32>
    %126 = vector.broadcast %124 : vector<1x128xf32> to vector<8x128xf32>
    %127 = arith.mulf %125, %126 : vector<8x128xf32>
    %128 = arith.addf %122, %127 : vector<8x128xf32>
    %cst_24 = arith.constant 0.000000e+00 : f32
    %129 = vector.broadcast %cst_24 : f32 to vector<8x128xf32>
    %130 = arith.maximumf %128, %129 : vector<8x128xf32>
    %131 = vector.broadcast %103 : vector<8x1xf32> to vector<8x128xf32>
    %132 = arith.mulf %130, %131 : vector<8x128xf32>
    %133 = arith.addf %100, %132 : vector<8x128xf32>
    %c32 = arith.constant 32 : index
    %c0_25 = arith.constant 0 : index
    %134 = vector.load %arg2[%c32, %c0_25] : memref<128x4xf32, #tpu.memory_space<vmem>>, vector<8x4xf32>
    %c32_26 = arith.constant 32 : index
    %c0_27 = arith.constant 0 : index
    %135 = vector.load %arg3[%c32_26, %c0_27] : memref<128x2xf32, #tpu.memory_space<vmem>>, vector<8x1xf32>
    %c32_28 = arith.constant 32 : index
    %c1_29 = arith.constant 1 : index
    %136 = vector.load %arg3[%c32_28, %c1_29] : memref<128x2xf32, #tpu.memory_space<vmem>>, vector<8x1xf32>
    %137 = vector.extract_strided_slice %134 {offsets = [0, 0], sizes = [8, 1], strides = [1, 1]} : vector<8x4xf32> to vector<8x1xf32>
    %138 = vector.extract_strided_slice %0 {offsets = [0, 0], sizes = [1, 128], strides = [1, 1]} : vector<4x128xf32> to vector<1x128xf32>
    %139 = vector.broadcast %137 : vector<8x1xf32> to vector<8x128xf32>
    %140 = vector.broadcast %138 : vector<1x128xf32> to vector<8x128xf32>
    %141 = arith.mulf %139, %140 : vector<8x128xf32>
    %142 = vector.broadcast %135 : vector<8x1xf32> to vector<8x128xf32>
    %143 = arith.addf %142, %141 : vector<8x128xf32>
    %144 = vector.extract_strided_slice %134 {offsets = [0, 1], sizes = [8, 1], strides = [1, 1]} : vector<8x4xf32> to vector<8x1xf32>
    %145 = vector.extract_strided_slice %0 {offsets = [1, 0], sizes = [1, 128], strides = [1, 1]} : vector<4x128xf32> to vector<1x128xf32>
    %146 = vector.broadcast %144 : vector<8x1xf32> to vector<8x128xf32>
    %147 = vector.broadcast %145 : vector<1x128xf32> to vector<8x128xf32>
    %148 = arith.mulf %146, %147 : vector<8x128xf32>
    %149 = arith.addf %143, %148 : vector<8x128xf32>
    %150 = vector.extract_strided_slice %134 {offsets = [0, 2], sizes = [8, 1], strides = [1, 1]} : vector<8x4xf32> to vector<8x1xf32>
    %151 = vector.extract_strided_slice %0 {offsets = [2, 0], sizes = [1, 128], strides = [1, 1]} : vector<4x128xf32> to vector<1x128xf32>
    %152 = vector.broadcast %150 : vector<8x1xf32> to vector<8x128xf32>
    %153 = vector.broadcast %151 : vector<1x128xf32> to vector<8x128xf32>
    %154 = arith.mulf %152, %153 : vector<8x128xf32>
    %155 = arith.addf %149, %154 : vector<8x128xf32>
    %156 = vector.extract_strided_slice %134 {offsets = [0, 3], sizes = [8, 1], strides = [1, 1]} : vector<8x4xf32> to vector<8x1xf32>
    %157 = vector.extract_strided_slice %0 {offsets = [3, 0], sizes = [1, 128], strides = [1, 1]} : vector<4x128xf32> to vector<1x128xf32>
    %158 = vector.broadcast %156 : vector<8x1xf32> to vector<8x128xf32>
    %159 = vector.broadcast %157 : vector<1x128xf32> to vector<8x128xf32>
    %160 = arith.mulf %158, %159 : vector<8x128xf32>
    %161 = arith.addf %155, %160 : vector<8x128xf32>
    %cst_30 = arith.constant 0.000000e+00 : f32
    %162 = vector.broadcast %cst_30 : f32 to vector<8x128xf32>
    %163 = arith.maximumf %161, %162 : vector<8x128xf32>
    %164 = vector.broadcast %136 : vector<8x1xf32> to vector<8x128xf32>
    %165 = arith.mulf %163, %164 : vector<8x128xf32>
    %166 = arith.addf %133, %165 : vector<8x128xf32>
    %c40 = arith.constant 40 : index
    %c0_31 = arith.constant 0 : index
    %167 = vector.load %arg2[%c40, %c0_31] : memref<128x4xf32, #tpu.memory_space<vmem>>, vector<8x4xf32>
    %c40_32 = arith.constant 40 : index
    %c0_33 = arith.constant 0 : index
    %168 = vector.load %arg3[%c40_32, %c0_33] : memref<128x2xf32, #tpu.memory_space<vmem>>, vector<8x1xf32>
    %c40_34 = arith.constant 40 : index
    %c1_35 = arith.constant 1 : index
    %169 = vector.load %arg3[%c40_34, %c1_35] : memref<128x2xf32, #tpu.memory_space<vmem>>, vector<8x1xf32>
    %170 = vector.extract_strided_slice %167 {offsets = [0, 0], sizes = [8, 1], strides = [1, 1]} : vector<8x4xf32> to vector<8x1xf32>
    %171 = vector.extract_strided_slice %0 {offsets = [0, 0], sizes = [1, 128], strides = [1, 1]} : vector<4x128xf32> to vector<1x128xf32>
    %172 = vector.broadcast %170 : vector<8x1xf32> to vector<8x128xf32>
    %173 = vector.broadcast %171 : vector<1x128xf32> to vector<8x128xf32>
    %174 = arith.mulf %172, %173 : vector<8x128xf32>
    %175 = vector.broadcast %168 : vector<8x1xf32> to vector<8x128xf32>
    %176 = arith.addf %175, %174 : vector<8x128xf32>
    %177 = vector.extract_strided_slice %167 {offsets = [0, 1], sizes = [8, 1], strides = [1, 1]} : vector<8x4xf32> to vector<8x1xf32>
    %178 = vector.extract_strided_slice %0 {offsets = [1, 0], sizes = [1, 128], strides = [1, 1]} : vector<4x128xf32> to vector<1x128xf32>
    %179 = vector.broadcast %177 : vector<8x1xf32> to vector<8x128xf32>
    %180 = vector.broadcast %178 : vector<1x128xf32> to vector<8x128xf32>
    %181 = arith.mulf %179, %180 : vector<8x128xf32>
    %182 = arith.addf %176, %181 : vector<8x128xf32>
    %183 = vector.extract_strided_slice %167 {offsets = [0, 2], sizes = [8, 1], strides = [1, 1]} : vector<8x4xf32> to vector<8x1xf32>
    %184 = vector.extract_strided_slice %0 {offsets = [2, 0], sizes = [1, 128], strides = [1, 1]} : vector<4x128xf32> to vector<1x128xf32>
    %185 = vector.broadcast %183 : vector<8x1xf32> to vector<8x128xf32>
    %186 = vector.broadcast %184 : vector<1x128xf32> to vector<8x128xf32>
    %187 = arith.mulf %185, %186 : vector<8x128xf32>
    %188 = arith.addf %182, %187 : vector<8x128xf32>
    %189 = vector.extract_strided_slice %167 {offsets = [0, 3], sizes = [8, 1], strides = [1, 1]} : vector<8x4xf32> to vector<8x1xf32>
    %190 = vector.extract_strided_slice %0 {offsets = [3, 0], sizes = [1, 128], strides = [1, 1]} : vector<4x128xf32> to vector<1x128xf32>
    %191 = vector.broadcast %189 : vector<8x1xf32> to vector<8x128xf32>
    %192 = vector.broadcast %190 : vector<1x128xf32> to vector<8x128xf32>
    %193 = arith.mulf %191, %192 : vector<8x128xf32>
    %194 = arith.addf %188, %193 : vector<8x128xf32>
    %cst_36 = arith.constant 0.000000e+00 : f32
    %195 = vector.broadcast %cst_36 : f32 to vector<8x128xf32>
    %196 = arith.maximumf %194, %195 : vector<8x128xf32>
    %197 = vector.broadcast %169 : vector<8x1xf32> to vector<8x128xf32>
    %198 = arith.mulf %196, %197 : vector<8x128xf32>
    %199 = arith.addf %166, %198 : vector<8x128xf32>
    %c48 = arith.constant 48 : index
    %c0_37 = arith.constant 0 : index
    %200 = vector.load %arg2[%c48, %c0_37] : memref<128x4xf32, #tpu.memory_space<vmem>>, vector<8x4xf32>
    %c48_38 = arith.constant 48 : index
    %c0_39 = arith.constant 0 : index
    %201 = vector.load %arg3[%c48_38, %c0_39] : memref<128x2xf32, #tpu.memory_space<vmem>>, vector<8x1xf32>
    %c48_40 = arith.constant 48 : index
    %c1_41 = arith.constant 1 : index
    %202 = vector.load %arg3[%c48_40, %c1_41] : memref<128x2xf32, #tpu.memory_space<vmem>>, vector<8x1xf32>
    %203 = vector.extract_strided_slice %200 {offsets = [0, 0], sizes = [8, 1], strides = [1, 1]} : vector<8x4xf32> to vector<8x1xf32>
    %204 = vector.extract_strided_slice %0 {offsets = [0, 0], sizes = [1, 128], strides = [1, 1]} : vector<4x128xf32> to vector<1x128xf32>
    %205 = vector.broadcast %203 : vector<8x1xf32> to vector<8x128xf32>
    %206 = vector.broadcast %204 : vector<1x128xf32> to vector<8x128xf32>
    %207 = arith.mulf %205, %206 : vector<8x128xf32>
    %208 = vector.broadcast %201 : vector<8x1xf32> to vector<8x128xf32>
    %209 = arith.addf %208, %207 : vector<8x128xf32>
    %210 = vector.extract_strided_slice %200 {offsets = [0, 1], sizes = [8, 1], strides = [1, 1]} : vector<8x4xf32> to vector<8x1xf32>
    %211 = vector.extract_strided_slice %0 {offsets = [1, 0], sizes = [1, 128], strides = [1, 1]} : vector<4x128xf32> to vector<1x128xf32>
    %212 = vector.broadcast %210 : vector<8x1xf32> to vector<8x128xf32>
    %213 = vector.broadcast %211 : vector<1x128xf32> to vector<8x128xf32>
    %214 = arith.mulf %212, %213 : vector<8x128xf32>
    %215 = arith.addf %209, %214 : vector<8x128xf32>
    %216 = vector.extract_strided_slice %200 {offsets = [0, 2], sizes = [8, 1], strides = [1, 1]} : vector<8x4xf32> to vector<8x1xf32>
    %217 = vector.extract_strided_slice %0 {offsets = [2, 0], sizes = [1, 128], strides = [1, 1]} : vector<4x128xf32> to vector<1x128xf32>
    %218 = vector.broadcast %216 : vector<8x1xf32> to vector<8x128xf32>
    %219 = vector.broadcast %217 : vector<1x128xf32> to vector<8x128xf32>
    %220 = arith.mulf %218, %219 : vector<8x128xf32>
    %221 = arith.addf %215, %220 : vector<8x128xf32>
    %222 = vector.extract_strided_slice %200 {offsets = [0, 3], sizes = [8, 1], strides = [1, 1]} : vector<8x4xf32> to vector<8x1xf32>
    %223 = vector.extract_strided_slice %0 {offsets = [3, 0], sizes = [1, 128], strides = [1, 1]} : vector<4x128xf32> to vector<1x128xf32>
    %224 = vector.broadcast %222 : vector<8x1xf32> to vector<8x128xf32>
    %225 = vector.broadcast %223 : vector<1x128xf32> to vector<8x128xf32>
    %226 = arith.mulf %224, %225 : vector<8x128xf32>
    %227 = arith.addf %221, %226 : vector<8x128xf32>
    %cst_42 = arith.constant 0.000000e+00 : f32
    %228 = vector.broadcast %cst_42 : f32 to vector<8x128xf32>
    %229 = arith.maximumf %227, %228 : vector<8x128xf32>
    %230 = vector.broadcast %202 : vector<8x1xf32> to vector<8x128xf32>
    %231 = arith.mulf %229, %230 : vector<8x128xf32>
    %232 = arith.addf %199, %231 : vector<8x128xf32>
    %c56 = arith.constant 56 : index
    %c0_43 = arith.constant 0 : index
    %233 = vector.load %arg2[%c56, %c0_43] : memref<128x4xf32, #tpu.memory_space<vmem>>, vector<8x4xf32>
    %c56_44 = arith.constant 56 : index
    %c0_45 = arith.constant 0 : index
    %234 = vector.load %arg3[%c56_44, %c0_45] : memref<128x2xf32, #tpu.memory_space<vmem>>, vector<8x1xf32>
    %c56_46 = arith.constant 56 : index
    %c1_47 = arith.constant 1 : index
    %235 = vector.load %arg3[%c56_46, %c1_47] : memref<128x2xf32, #tpu.memory_space<vmem>>, vector<8x1xf32>
    %236 = vector.extract_strided_slice %233 {offsets = [0, 0], sizes = [8, 1], strides = [1, 1]} : vector<8x4xf32> to vector<8x1xf32>
    %237 = vector.extract_strided_slice %0 {offsets = [0, 0], sizes = [1, 128], strides = [1, 1]} : vector<4x128xf32> to vector<1x128xf32>
    %238 = vector.broadcast %236 : vector<8x1xf32> to vector<8x128xf32>
    %239 = vector.broadcast %237 : vector<1x128xf32> to vector<8x128xf32>
    %240 = arith.mulf %238, %239 : vector<8x128xf32>
    %241 = vector.broadcast %234 : vector<8x1xf32> to vector<8x128xf32>
    %242 = arith.addf %241, %240 : vector<8x128xf32>
    %243 = vector.extract_strided_slice %233 {offsets = [0, 1], sizes = [8, 1], strides = [1, 1]} : vector<8x4xf32> to vector<8x1xf32>
    %244 = vector.extract_strided_slice %0 {offsets = [1, 0], sizes = [1, 128], strides = [1, 1]} : vector<4x128xf32> to vector<1x128xf32>
    %245 = vector.broadcast %243 : vector<8x1xf32> to vector<8x128xf32>
    %246 = vector.broadcast %244 : vector<1x128xf32> to vector<8x128xf32>
    %247 = arith.mulf %245, %246 : vector<8x128xf32>
    %248 = arith.addf %242, %247 : vector<8x128xf32>
    %249 = vector.extract_strided_slice %233 {offsets = [0, 2], sizes = [8, 1], strides = [1, 1]} : vector<8x4xf32> to vector<8x1xf32>
    %250 = vector.extract_strided_slice %0 {offsets = [2, 0], sizes = [1, 128], strides = [1, 1]} : vector<4x128xf32> to vector<1x128xf32>
    %251 = vector.broadcast %249 : vector<8x1xf32> to vector<8x128xf32>
    %252 = vector.broadcast %250 : vector<1x128xf32> to vector<8x128xf32>
    %253 = arith.mulf %251, %252 : vector<8x128xf32>
    %254 = arith.addf %248, %253 : vector<8x128xf32>
    %255 = vector.extract_strided_slice %233 {offsets = [0, 3], sizes = [8, 1], strides = [1, 1]} : vector<8x4xf32> to vector<8x1xf32>
    %256 = vector.extract_strided_slice %0 {offsets = [3, 0], sizes = [1, 128], strides = [1, 1]} : vector<4x128xf32> to vector<1x128xf32>
    %257 = vector.broadcast %255 : vector<8x1xf32> to vector<8x128xf32>
    %258 = vector.broadcast %256 : vector<1x128xf32> to vector<8x128xf32>
    %259 = arith.mulf %257, %258 : vector<8x128xf32>
    %260 = arith.addf %254, %259 : vector<8x128xf32>
    %cst_48 = arith.constant 0.000000e+00 : f32
    %261 = vector.broadcast %cst_48 : f32 to vector<8x128xf32>
    %262 = arith.maximumf %260, %261 : vector<8x128xf32>
    %263 = vector.broadcast %235 : vector<8x1xf32> to vector<8x128xf32>
    %264 = arith.mulf %262, %263 : vector<8x128xf32>
    %265 = arith.addf %232, %264 : vector<8x128xf32>
    %c64 = arith.constant 64 : index
    %c0_49 = arith.constant 0 : index
    %266 = vector.load %arg2[%c64, %c0_49] : memref<128x4xf32, #tpu.memory_space<vmem>>, vector<8x4xf32>
    %c64_50 = arith.constant 64 : index
    %c0_51 = arith.constant 0 : index
    %267 = vector.load %arg3[%c64_50, %c0_51] : memref<128x2xf32, #tpu.memory_space<vmem>>, vector<8x1xf32>
    %c64_52 = arith.constant 64 : index
    %c1_53 = arith.constant 1 : index
    %268 = vector.load %arg3[%c64_52, %c1_53] : memref<128x2xf32, #tpu.memory_space<vmem>>, vector<8x1xf32>
    %269 = vector.extract_strided_slice %266 {offsets = [0, 0], sizes = [8, 1], strides = [1, 1]} : vector<8x4xf32> to vector<8x1xf32>
    %270 = vector.extract_strided_slice %0 {offsets = [0, 0], sizes = [1, 128], strides = [1, 1]} : vector<4x128xf32> to vector<1x128xf32>
    %271 = vector.broadcast %269 : vector<8x1xf32> to vector<8x128xf32>
    %272 = vector.broadcast %270 : vector<1x128xf32> to vector<8x128xf32>
    %273 = arith.mulf %271, %272 : vector<8x128xf32>
    %274 = vector.broadcast %267 : vector<8x1xf32> to vector<8x128xf32>
    %275 = arith.addf %274, %273 : vector<8x128xf32>
    %276 = vector.extract_strided_slice %266 {offsets = [0, 1], sizes = [8, 1], strides = [1, 1]} : vector<8x4xf32> to vector<8x1xf32>
    %277 = vector.extract_strided_slice %0 {offsets = [1, 0], sizes = [1, 128], strides = [1, 1]} : vector<4x128xf32> to vector<1x128xf32>
    %278 = vector.broadcast %276 : vector<8x1xf32> to vector<8x128xf32>
    %279 = vector.broadcast %277 : vector<1x128xf32> to vector<8x128xf32>
    %280 = arith.mulf %278, %279 : vector<8x128xf32>
    %281 = arith.addf %275, %280 : vector<8x128xf32>
    %282 = vector.extract_strided_slice %266 {offsets = [0, 2], sizes = [8, 1], strides = [1, 1]} : vector<8x4xf32> to vector<8x1xf32>
    %283 = vector.extract_strided_slice %0 {offsets = [2, 0], sizes = [1, 128], strides = [1, 1]} : vector<4x128xf32> to vector<1x128xf32>
    %284 = vector.broadcast %282 : vector<8x1xf32> to vector<8x128xf32>
    %285 = vector.broadcast %283 : vector<1x128xf32> to vector<8x128xf32>
    %286 = arith.mulf %284, %285 : vector<8x128xf32>
    %287 = arith.addf %281, %286 : vector<8x128xf32>
    %288 = vector.extract_strided_slice %266 {offsets = [0, 3], sizes = [8, 1], strides = [1, 1]} : vector<8x4xf32> to vector<8x1xf32>
    %289 = vector.extract_strided_slice %0 {offsets = [3, 0], sizes = [1, 128], strides = [1, 1]} : vector<4x128xf32> to vector<1x128xf32>
    %290 = vector.broadcast %288 : vector<8x1xf32> to vector<8x128xf32>
    %291 = vector.broadcast %289 : vector<1x128xf32> to vector<8x128xf32>
    %292 = arith.mulf %290, %291 : vector<8x128xf32>
    %293 = arith.addf %287, %292 : vector<8x128xf32>
    %cst_54 = arith.constant 0.000000e+00 : f32
    %294 = vector.broadcast %cst_54 : f32 to vector<8x128xf32>
    %295 = arith.maximumf %293, %294 : vector<8x128xf32>
    %296 = vector.broadcast %268 : vector<8x1xf32> to vector<8x128xf32>
    %297 = arith.mulf %295, %296 : vector<8x128xf32>
    %298 = arith.addf %265, %297 : vector<8x128xf32>
    %c72 = arith.constant 72 : index
    %c0_55 = arith.constant 0 : index
    %299 = vector.load %arg2[%c72, %c0_55] : memref<128x4xf32, #tpu.memory_space<vmem>>, vector<8x4xf32>
    %c72_56 = arith.constant 72 : index
    %c0_57 = arith.constant 0 : index
    %300 = vector.load %arg3[%c72_56, %c0_57] : memref<128x2xf32, #tpu.memory_space<vmem>>, vector<8x1xf32>
    %c72_58 = arith.constant 72 : index
    %c1_59 = arith.constant 1 : index
    %301 = vector.load %arg3[%c72_58, %c1_59] : memref<128x2xf32, #tpu.memory_space<vmem>>, vector<8x1xf32>
    %302 = vector.extract_strided_slice %299 {offsets = [0, 0], sizes = [8, 1], strides = [1, 1]} : vector<8x4xf32> to vector<8x1xf32>
    %303 = vector.extract_strided_slice %0 {offsets = [0, 0], sizes = [1, 128], strides = [1, 1]} : vector<4x128xf32> to vector<1x128xf32>
    %304 = vector.broadcast %302 : vector<8x1xf32> to vector<8x128xf32>
    %305 = vector.broadcast %303 : vector<1x128xf32> to vector<8x128xf32>
    %306 = arith.mulf %304, %305 : vector<8x128xf32>
    %307 = vector.broadcast %300 : vector<8x1xf32> to vector<8x128xf32>
    %308 = arith.addf %307, %306 : vector<8x128xf32>
    %309 = vector.extract_strided_slice %299 {offsets = [0, 1], sizes = [8, 1], strides = [1, 1]} : vector<8x4xf32> to vector<8x1xf32>
    %310 = vector.extract_strided_slice %0 {offsets = [1, 0], sizes = [1, 128], strides = [1, 1]} : vector<4x128xf32> to vector<1x128xf32>
    %311 = vector.broadcast %309 : vector<8x1xf32> to vector<8x128xf32>
    %312 = vector.broadcast %310 : vector<1x128xf32> to vector<8x128xf32>
    %313 = arith.mulf %311, %312 : vector<8x128xf32>
    %314 = arith.addf %308, %313 : vector<8x128xf32>
    %315 = vector.extract_strided_slice %299 {offsets = [0, 2], sizes = [8, 1], strides = [1, 1]} : vector<8x4xf32> to vector<8x1xf32>
    %316 = vector.extract_strided_slice %0 {offsets = [2, 0], sizes = [1, 128], strides = [1, 1]} : vector<4x128xf32> to vector<1x128xf32>
    %317 = vector.broadcast %315 : vector<8x1xf32> to vector<8x128xf32>
    %318 = vector.broadcast %316 : vector<1x128xf32> to vector<8x128xf32>
    %319 = arith.mulf %317, %318 : vector<8x128xf32>
    %320 = arith.addf %314, %319 : vector<8x128xf32>
    %321 = vector.extract_strided_slice %299 {offsets = [0, 3], sizes = [8, 1], strides = [1, 1]} : vector<8x4xf32> to vector<8x1xf32>
    %322 = vector.extract_strided_slice %0 {offsets = [3, 0], sizes = [1, 128], strides = [1, 1]} : vector<4x128xf32> to vector<1x128xf32>
    %323 = vector.broadcast %321 : vector<8x1xf32> to vector<8x128xf32>
    %324 = vector.broadcast %322 : vector<1x128xf32> to vector<8x128xf32>
    %325 = arith.mulf %323, %324 : vector<8x128xf32>
    %326 = arith.addf %320, %325 : vector<8x128xf32>
    %cst_60 = arith.constant 0.000000e+00 : f32
    %327 = vector.broadcast %cst_60 : f32 to vector<8x128xf32>
    %328 = arith.maximumf %326, %327 : vector<8x128xf32>
    %329 = vector.broadcast %301 : vector<8x1xf32> to vector<8x128xf32>
    %330 = arith.mulf %328, %329 : vector<8x128xf32>
    %331 = arith.addf %298, %330 : vector<8x128xf32>
    %c80 = arith.constant 80 : index
    %c0_61 = arith.constant 0 : index
    %332 = vector.load %arg2[%c80, %c0_61] : memref<128x4xf32, #tpu.memory_space<vmem>>, vector<8x4xf32>
    %c80_62 = arith.constant 80 : index
    %c0_63 = arith.constant 0 : index
    %333 = vector.load %arg3[%c80_62, %c0_63] : memref<128x2xf32, #tpu.memory_space<vmem>>, vector<8x1xf32>
    %c80_64 = arith.constant 80 : index
    %c1_65 = arith.constant 1 : index
    %334 = vector.load %arg3[%c80_64, %c1_65] : memref<128x2xf32, #tpu.memory_space<vmem>>, vector<8x1xf32>
    %335 = vector.extract_strided_slice %332 {offsets = [0, 0], sizes = [8, 1], strides = [1, 1]} : vector<8x4xf32> to vector<8x1xf32>
    %336 = vector.extract_strided_slice %0 {offsets = [0, 0], sizes = [1, 128], strides = [1, 1]} : vector<4x128xf32> to vector<1x128xf32>
    %337 = vector.broadcast %335 : vector<8x1xf32> to vector<8x128xf32>
    %338 = vector.broadcast %336 : vector<1x128xf32> to vector<8x128xf32>
    %339 = arith.mulf %337, %338 : vector<8x128xf32>
    %340 = vector.broadcast %333 : vector<8x1xf32> to vector<8x128xf32>
    %341 = arith.addf %340, %339 : vector<8x128xf32>
    %342 = vector.extract_strided_slice %332 {offsets = [0, 1], sizes = [8, 1], strides = [1, 1]} : vector<8x4xf32> to vector<8x1xf32>
    %343 = vector.extract_strided_slice %0 {offsets = [1, 0], sizes = [1, 128], strides = [1, 1]} : vector<4x128xf32> to vector<1x128xf32>
    %344 = vector.broadcast %342 : vector<8x1xf32> to vector<8x128xf32>
    %345 = vector.broadcast %343 : vector<1x128xf32> to vector<8x128xf32>
    %346 = arith.mulf %344, %345 : vector<8x128xf32>
    %347 = arith.addf %341, %346 : vector<8x128xf32>
    %348 = vector.extract_strided_slice %332 {offsets = [0, 2], sizes = [8, 1], strides = [1, 1]} : vector<8x4xf32> to vector<8x1xf32>
    %349 = vector.extract_strided_slice %0 {offsets = [2, 0], sizes = [1, 128], strides = [1, 1]} : vector<4x128xf32> to vector<1x128xf32>
    %350 = vector.broadcast %348 : vector<8x1xf32> to vector<8x128xf32>
    %351 = vector.broadcast %349 : vector<1x128xf32> to vector<8x128xf32>
    %352 = arith.mulf %350, %351 : vector<8x128xf32>
    %353 = arith.addf %347, %352 : vector<8x128xf32>
    %354 = vector.extract_strided_slice %332 {offsets = [0, 3], sizes = [8, 1], strides = [1, 1]} : vector<8x4xf32> to vector<8x1xf32>
    %355 = vector.extract_strided_slice %0 {offsets = [3, 0], sizes = [1, 128], strides = [1, 1]} : vector<4x128xf32> to vector<1x128xf32>
    %356 = vector.broadcast %354 : vector<8x1xf32> to vector<8x128xf32>
    %357 = vector.broadcast %355 : vector<1x128xf32> to vector<8x128xf32>
    %358 = arith.mulf %356, %357 : vector<8x128xf32>
    %359 = arith.addf %353, %358 : vector<8x128xf32>
    %cst_66 = arith.constant 0.000000e+00 : f32
    %360 = vector.broadcast %cst_66 : f32 to vector<8x128xf32>
    %361 = arith.maximumf %359, %360 : vector<8x128xf32>
    %362 = vector.broadcast %334 : vector<8x1xf32> to vector<8x128xf32>
    %363 = arith.mulf %361, %362 : vector<8x128xf32>
    %364 = arith.addf %331, %363 : vector<8x128xf32>
    %c88 = arith.constant 88 : index
    %c0_67 = arith.constant 0 : index
    %365 = vector.load %arg2[%c88, %c0_67] : memref<128x4xf32, #tpu.memory_space<vmem>>, vector<8x4xf32>
    %c88_68 = arith.constant 88 : index
    %c0_69 = arith.constant 0 : index
    %366 = vector.load %arg3[%c88_68, %c0_69] : memref<128x2xf32, #tpu.memory_space<vmem>>, vector<8x1xf32>
    %c88_70 = arith.constant 88 : index
    %c1_71 = arith.constant 1 : index
    %367 = vector.load %arg3[%c88_70, %c1_71] : memref<128x2xf32, #tpu.memory_space<vmem>>, vector<8x1xf32>
    %368 = vector.extract_strided_slice %365 {offsets = [0, 0], sizes = [8, 1], strides = [1, 1]} : vector<8x4xf32> to vector<8x1xf32>
    %369 = vector.extract_strided_slice %0 {offsets = [0, 0], sizes = [1, 128], strides = [1, 1]} : vector<4x128xf32> to vector<1x128xf32>
    %370 = vector.broadcast %368 : vector<8x1xf32> to vector<8x128xf32>
    %371 = vector.broadcast %369 : vector<1x128xf32> to vector<8x128xf32>
    %372 = arith.mulf %370, %371 : vector<8x128xf32>
    %373 = vector.broadcast %366 : vector<8x1xf32> to vector<8x128xf32>
    %374 = arith.addf %373, %372 : vector<8x128xf32>
    %375 = vector.extract_strided_slice %365 {offsets = [0, 1], sizes = [8, 1], strides = [1, 1]} : vector<8x4xf32> to vector<8x1xf32>
    %376 = vector.extract_strided_slice %0 {offsets = [1, 0], sizes = [1, 128], strides = [1, 1]} : vector<4x128xf32> to vector<1x128xf32>
    %377 = vector.broadcast %375 : vector<8x1xf32> to vector<8x128xf32>
    %378 = vector.broadcast %376 : vector<1x128xf32> to vector<8x128xf32>
    %379 = arith.mulf %377, %378 : vector<8x128xf32>
    %380 = arith.addf %374, %379 : vector<8x128xf32>
    %381 = vector.extract_strided_slice %365 {offsets = [0, 2], sizes = [8, 1], strides = [1, 1]} : vector<8x4xf32> to vector<8x1xf32>
    %382 = vector.extract_strided_slice %0 {offsets = [2, 0], sizes = [1, 128], strides = [1, 1]} : vector<4x128xf32> to vector<1x128xf32>
    %383 = vector.broadcast %381 : vector<8x1xf32> to vector<8x128xf32>
    %384 = vector.broadcast %382 : vector<1x128xf32> to vector<8x128xf32>
    %385 = arith.mulf %383, %384 : vector<8x128xf32>
    %386 = arith.addf %380, %385 : vector<8x128xf32>
    %387 = vector.extract_strided_slice %365 {offsets = [0, 3], sizes = [8, 1], strides = [1, 1]} : vector<8x4xf32> to vector<8x1xf32>
    %388 = vector.extract_strided_slice %0 {offsets = [3, 0], sizes = [1, 128], strides = [1, 1]} : vector<4x128xf32> to vector<1x128xf32>
    %389 = vector.broadcast %387 : vector<8x1xf32> to vector<8x128xf32>
    %390 = vector.broadcast %388 : vector<1x128xf32> to vector<8x128xf32>
    %391 = arith.mulf %389, %390 : vector<8x128xf32>
    %392 = arith.addf %386, %391 : vector<8x128xf32>
    %cst_72 = arith.constant 0.000000e+00 : f32
    %393 = vector.broadcast %cst_72 : f32 to vector<8x128xf32>
    %394 = arith.maximumf %392, %393 : vector<8x128xf32>
    %395 = vector.broadcast %367 : vector<8x1xf32> to vector<8x128xf32>
    %396 = arith.mulf %394, %395 : vector<8x128xf32>
    %397 = arith.addf %364, %396 : vector<8x128xf32>
    %c96 = arith.constant 96 : index
    %c0_73 = arith.constant 0 : index
    %398 = vector.load %arg2[%c96, %c0_73] : memref<128x4xf32, #tpu.memory_space<vmem>>, vector<8x4xf32>
    %c96_74 = arith.constant 96 : index
    %c0_75 = arith.constant 0 : index
    %399 = vector.load %arg3[%c96_74, %c0_75] : memref<128x2xf32, #tpu.memory_space<vmem>>, vector<8x1xf32>
    %c96_76 = arith.constant 96 : index
    %c1_77 = arith.constant 1 : index
    %400 = vector.load %arg3[%c96_76, %c1_77] : memref<128x2xf32, #tpu.memory_space<vmem>>, vector<8x1xf32>
    %401 = vector.extract_strided_slice %398 {offsets = [0, 0], sizes = [8, 1], strides = [1, 1]} : vector<8x4xf32> to vector<8x1xf32>
    %402 = vector.extract_strided_slice %0 {offsets = [0, 0], sizes = [1, 128], strides = [1, 1]} : vector<4x128xf32> to vector<1x128xf32>
    %403 = vector.broadcast %401 : vector<8x1xf32> to vector<8x128xf32>
    %404 = vector.broadcast %402 : vector<1x128xf32> to vector<8x128xf32>
    %405 = arith.mulf %403, %404 : vector<8x128xf32>
    %406 = vector.broadcast %399 : vector<8x1xf32> to vector<8x128xf32>
    %407 = arith.addf %406, %405 : vector<8x128xf32>
    %408 = vector.extract_strided_slice %398 {offsets = [0, 1], sizes = [8, 1], strides = [1, 1]} : vector<8x4xf32> to vector<8x1xf32>
    %409 = vector.extract_strided_slice %0 {offsets = [1, 0], sizes = [1, 128], strides = [1, 1]} : vector<4x128xf32> to vector<1x128xf32>
    %410 = vector.broadcast %408 : vector<8x1xf32> to vector<8x128xf32>
    %411 = vector.broadcast %409 : vector<1x128xf32> to vector<8x128xf32>
    %412 = arith.mulf %410, %411 : vector<8x128xf32>
    %413 = arith.addf %407, %412 : vector<8x128xf32>
    %414 = vector.extract_strided_slice %398 {offsets = [0, 2], sizes = [8, 1], strides = [1, 1]} : vector<8x4xf32> to vector<8x1xf32>
    %415 = vector.extract_strided_slice %0 {offsets = [2, 0], sizes = [1, 128], strides = [1, 1]} : vector<4x128xf32> to vector<1x128xf32>
    %416 = vector.broadcast %414 : vector<8x1xf32> to vector<8x128xf32>
    %417 = vector.broadcast %415 : vector<1x128xf32> to vector<8x128xf32>
    %418 = arith.mulf %416, %417 : vector<8x128xf32>
    %419 = arith.addf %413, %418 : vector<8x128xf32>
    %420 = vector.extract_strided_slice %398 {offsets = [0, 3], sizes = [8, 1], strides = [1, 1]} : vector<8x4xf32> to vector<8x1xf32>
    %421 = vector.extract_strided_slice %0 {offsets = [3, 0], sizes = [1, 128], strides = [1, 1]} : vector<4x128xf32> to vector<1x128xf32>
    %422 = vector.broadcast %420 : vector<8x1xf32> to vector<8x128xf32>
    %423 = vector.broadcast %421 : vector<1x128xf32> to vector<8x128xf32>
    %424 = arith.mulf %422, %423 : vector<8x128xf32>
    %425 = arith.addf %419, %424 : vector<8x128xf32>
    %cst_78 = arith.constant 0.000000e+00 : f32
    %426 = vector.broadcast %cst_78 : f32 to vector<8x128xf32>
    %427 = arith.maximumf %425, %426 : vector<8x128xf32>
    %428 = vector.broadcast %400 : vector<8x1xf32> to vector<8x128xf32>
    %429 = arith.mulf %427, %428 : vector<8x128xf32>
    %430 = arith.addf %397, %429 : vector<8x128xf32>
    %c104 = arith.constant 104 : index
    %c0_79 = arith.constant 0 : index
    %431 = vector.load %arg2[%c104, %c0_79] : memref<128x4xf32, #tpu.memory_space<vmem>>, vector<8x4xf32>
    %c104_80 = arith.constant 104 : index
    %c0_81 = arith.constant 0 : index
    %432 = vector.load %arg3[%c104_80, %c0_81] : memref<128x2xf32, #tpu.memory_space<vmem>>, vector<8x1xf32>
    %c104_82 = arith.constant 104 : index
    %c1_83 = arith.constant 1 : index
    %433 = vector.load %arg3[%c104_82, %c1_83] : memref<128x2xf32, #tpu.memory_space<vmem>>, vector<8x1xf32>
    %434 = vector.extract_strided_slice %431 {offsets = [0, 0], sizes = [8, 1], strides = [1, 1]} : vector<8x4xf32> to vector<8x1xf32>
    %435 = vector.extract_strided_slice %0 {offsets = [0, 0], sizes = [1, 128], strides = [1, 1]} : vector<4x128xf32> to vector<1x128xf32>
    %436 = vector.broadcast %434 : vector<8x1xf32> to vector<8x128xf32>
    %437 = vector.broadcast %435 : vector<1x128xf32> to vector<8x128xf32>
    %438 = arith.mulf %436, %437 : vector<8x128xf32>
    %439 = vector.broadcast %432 : vector<8x1xf32> to vector<8x128xf32>
    %440 = arith.addf %439, %438 : vector<8x128xf32>
    %441 = vector.extract_strided_slice %431 {offsets = [0, 1], sizes = [8, 1], strides = [1, 1]} : vector<8x4xf32> to vector<8x1xf32>
    %442 = vector.extract_strided_slice %0 {offsets = [1, 0], sizes = [1, 128], strides = [1, 1]} : vector<4x128xf32> to vector<1x128xf32>
    %443 = vector.broadcast %441 : vector<8x1xf32> to vector<8x128xf32>
    %444 = vector.broadcast %442 : vector<1x128xf32> to vector<8x128xf32>
    %445 = arith.mulf %443, %444 : vector<8x128xf32>
    %446 = arith.addf %440, %445 : vector<8x128xf32>
    %447 = vector.extract_strided_slice %431 {offsets = [0, 2], sizes = [8, 1], strides = [1, 1]} : vector<8x4xf32> to vector<8x1xf32>
    %448 = vector.extract_strided_slice %0 {offsets = [2, 0], sizes = [1, 128], strides = [1, 1]} : vector<4x128xf32> to vector<1x128xf32>
    %449 = vector.broadcast %447 : vector<8x1xf32> to vector<8x128xf32>
    %450 = vector.broadcast %448 : vector<1x128xf32> to vector<8x128xf32>
    %451 = arith.mulf %449, %450 : vector<8x128xf32>
    %452 = arith.addf %446, %451 : vector<8x128xf32>
    %453 = vector.extract_strided_slice %431 {offsets = [0, 3], sizes = [8, 1], strides = [1, 1]} : vector<8x4xf32> to vector<8x1xf32>
    %454 = vector.extract_strided_slice %0 {offsets = [3, 0], sizes = [1, 128], strides = [1, 1]} : vector<4x128xf32> to vector<1x128xf32>
    %455 = vector.broadcast %453 : vector<8x1xf32> to vector<8x128xf32>
    %456 = vector.broadcast %454 : vector<1x128xf32> to vector<8x128xf32>
    %457 = arith.mulf %455, %456 : vector<8x128xf32>
    %458 = arith.addf %452, %457 : vector<8x128xf32>
    %cst_84 = arith.constant 0.000000e+00 : f32
    %459 = vector.broadcast %cst_84 : f32 to vector<8x128xf32>
    %460 = arith.maximumf %458, %459 : vector<8x128xf32>
    %461 = vector.broadcast %433 : vector<8x1xf32> to vector<8x128xf32>
    %462 = arith.mulf %460, %461 : vector<8x128xf32>
    %463 = arith.addf %430, %462 : vector<8x128xf32>
    %c112 = arith.constant 112 : index
    %c0_85 = arith.constant 0 : index
    %464 = vector.load %arg2[%c112, %c0_85] : memref<128x4xf32, #tpu.memory_space<vmem>>, vector<8x4xf32>
    %c112_86 = arith.constant 112 : index
    %c0_87 = arith.constant 0 : index
    %465 = vector.load %arg3[%c112_86, %c0_87] : memref<128x2xf32, #tpu.memory_space<vmem>>, vector<8x1xf32>
    %c112_88 = arith.constant 112 : index
    %c1_89 = arith.constant 1 : index
    %466 = vector.load %arg3[%c112_88, %c1_89] : memref<128x2xf32, #tpu.memory_space<vmem>>, vector<8x1xf32>
    %467 = vector.extract_strided_slice %464 {offsets = [0, 0], sizes = [8, 1], strides = [1, 1]} : vector<8x4xf32> to vector<8x1xf32>
    %468 = vector.extract_strided_slice %0 {offsets = [0, 0], sizes = [1, 128], strides = [1, 1]} : vector<4x128xf32> to vector<1x128xf32>
    %469 = vector.broadcast %467 : vector<8x1xf32> to vector<8x128xf32>
    %470 = vector.broadcast %468 : vector<1x128xf32> to vector<8x128xf32>
    %471 = arith.mulf %469, %470 : vector<8x128xf32>
    %472 = vector.broadcast %465 : vector<8x1xf32> to vector<8x128xf32>
    %473 = arith.addf %472, %471 : vector<8x128xf32>
    %474 = vector.extract_strided_slice %464 {offsets = [0, 1], sizes = [8, 1], strides = [1, 1]} : vector<8x4xf32> to vector<8x1xf32>
    %475 = vector.extract_strided_slice %0 {offsets = [1, 0], sizes = [1, 128], strides = [1, 1]} : vector<4x128xf32> to vector<1x128xf32>
    %476 = vector.broadcast %474 : vector<8x1xf32> to vector<8x128xf32>
    %477 = vector.broadcast %475 : vector<1x128xf32> to vector<8x128xf32>
    %478 = arith.mulf %476, %477 : vector<8x128xf32>
    %479 = arith.addf %473, %478 : vector<8x128xf32>
    %480 = vector.extract_strided_slice %464 {offsets = [0, 2], sizes = [8, 1], strides = [1, 1]} : vector<8x4xf32> to vector<8x1xf32>
    %481 = vector.extract_strided_slice %0 {offsets = [2, 0], sizes = [1, 128], strides = [1, 1]} : vector<4x128xf32> to vector<1x128xf32>
    %482 = vector.broadcast %480 : vector<8x1xf32> to vector<8x128xf32>
    %483 = vector.broadcast %481 : vector<1x128xf32> to vector<8x128xf32>
    %484 = arith.mulf %482, %483 : vector<8x128xf32>
    %485 = arith.addf %479, %484 : vector<8x128xf32>
    %486 = vector.extract_strided_slice %464 {offsets = [0, 3], sizes = [8, 1], strides = [1, 1]} : vector<8x4xf32> to vector<8x1xf32>
    %487 = vector.extract_strided_slice %0 {offsets = [3, 0], sizes = [1, 128], strides = [1, 1]} : vector<4x128xf32> to vector<1x128xf32>
    %488 = vector.broadcast %486 : vector<8x1xf32> to vector<8x128xf32>
    %489 = vector.broadcast %487 : vector<1x128xf32> to vector<8x128xf32>
    %490 = arith.mulf %488, %489 : vector<8x128xf32>
    %491 = arith.addf %485, %490 : vector<8x128xf32>
    %cst_90 = arith.constant 0.000000e+00 : f32
    %492 = vector.broadcast %cst_90 : f32 to vector<8x128xf32>
    %493 = arith.maximumf %491, %492 : vector<8x128xf32>
    %494 = vector.broadcast %466 : vector<8x1xf32> to vector<8x128xf32>
    %495 = arith.mulf %493, %494 : vector<8x128xf32>
    %496 = arith.addf %463, %495 : vector<8x128xf32>
    %c120 = arith.constant 120 : index
    %c0_91 = arith.constant 0 : index
    %497 = vector.load %arg2[%c120, %c0_91] : memref<128x4xf32, #tpu.memory_space<vmem>>, vector<8x4xf32>
    %c120_92 = arith.constant 120 : index
    %c0_93 = arith.constant 0 : index
    %498 = vector.load %arg3[%c120_92, %c0_93] : memref<128x2xf32, #tpu.memory_space<vmem>>, vector<8x1xf32>
    %c120_94 = arith.constant 120 : index
    %c1_95 = arith.constant 1 : index
    %499 = vector.load %arg3[%c120_94, %c1_95] : memref<128x2xf32, #tpu.memory_space<vmem>>, vector<8x1xf32>
    %500 = vector.extract_strided_slice %497 {offsets = [0, 0], sizes = [8, 1], strides = [1, 1]} : vector<8x4xf32> to vector<8x1xf32>
    %501 = vector.extract_strided_slice %0 {offsets = [0, 0], sizes = [1, 128], strides = [1, 1]} : vector<4x128xf32> to vector<1x128xf32>
    %502 = vector.broadcast %500 : vector<8x1xf32> to vector<8x128xf32>
    %503 = vector.broadcast %501 : vector<1x128xf32> to vector<8x128xf32>
    %504 = arith.mulf %502, %503 : vector<8x128xf32>
    %505 = vector.broadcast %498 : vector<8x1xf32> to vector<8x128xf32>
    %506 = arith.addf %505, %504 : vector<8x128xf32>
    %507 = vector.extract_strided_slice %497 {offsets = [0, 1], sizes = [8, 1], strides = [1, 1]} : vector<8x4xf32> to vector<8x1xf32>
    %508 = vector.extract_strided_slice %0 {offsets = [1, 0], sizes = [1, 128], strides = [1, 1]} : vector<4x128xf32> to vector<1x128xf32>
    %509 = vector.broadcast %507 : vector<8x1xf32> to vector<8x128xf32>
    %510 = vector.broadcast %508 : vector<1x128xf32> to vector<8x128xf32>
    %511 = arith.mulf %509, %510 : vector<8x128xf32>
    %512 = arith.addf %506, %511 : vector<8x128xf32>
    %513 = vector.extract_strided_slice %497 {offsets = [0, 2], sizes = [8, 1], strides = [1, 1]} : vector<8x4xf32> to vector<8x1xf32>
    %514 = vector.extract_strided_slice %0 {offsets = [2, 0], sizes = [1, 128], strides = [1, 1]} : vector<4x128xf32> to vector<1x128xf32>
    %515 = vector.broadcast %513 : vector<8x1xf32> to vector<8x128xf32>
    %516 = vector.broadcast %514 : vector<1x128xf32> to vector<8x128xf32>
    %517 = arith.mulf %515, %516 : vector<8x128xf32>
    %518 = arith.addf %512, %517 : vector<8x128xf32>
    %519 = vector.extract_strided_slice %497 {offsets = [0, 3], sizes = [8, 1], strides = [1, 1]} : vector<8x4xf32> to vector<8x1xf32>
    %520 = vector.extract_strided_slice %0 {offsets = [3, 0], sizes = [1, 128], strides = [1, 1]} : vector<4x128xf32> to vector<1x128xf32>
    %521 = vector.broadcast %519 : vector<8x1xf32> to vector<8x128xf32>
    %522 = vector.broadcast %520 : vector<1x128xf32> to vector<8x128xf32>
    %523 = arith.mulf %521, %522 : vector<8x128xf32>
    %524 = arith.addf %518, %523 : vector<8x128xf32>
    %cst_96 = arith.constant 0.000000e+00 : f32
    %525 = vector.broadcast %cst_96 : f32 to vector<8x128xf32>
    %526 = arith.maximumf %524, %525 : vector<8x128xf32>
    %527 = vector.broadcast %499 : vector<8x1xf32> to vector<8x128xf32>
    %528 = arith.mulf %526, %527 : vector<8x128xf32>
    %529 = arith.addf %496, %528 : vector<8x128xf32>
    %cst_97 = arith.constant dense<0.000000e+00> : vector<128xf32>
    %530 = vector.multi_reduction <add>, %529, %cst_97 [0] : vector<8x128xf32> to vector<128xf32>
    %531 = vector.shape_cast %530 : vector<128xf32> to vector<1x128xf32>
    %c0_98 = arith.constant 0 : index
    %c0_99 = arith.constant 0 : index
    %532 = memref.load %arg4[%c0_98, %c0_99] : memref<1x1xf32, #tpu.memory_space<smem>>
    %533 = vector.broadcast %532 : f32 to vector<1x128xf32>
    %534 = arith.addf %531, %533 : vector<1x128xf32>
    %c0_100 = arith.constant 0 : index
    %c0_101 = arith.constant 0 : index
    %535 = vector.load %arg5[%c0_100, %c0_101] : memref<1x128xf32, #tpu.memory_space<vmem>>, vector<1x128xf32>
    tpu.vector_store %arg5[%c0_100, %c0_101], %534 {strides = array<i32>} : memref<1x128xf32, #tpu.memory_space<vmem>>, vector<1x128xf32>,
    return
  }
  func.func @transform_0(%arg0: i32) -> (i32, i32) {
    %c0_i32 = arith.constant 0 : i32
    %c0_i32_0 = arith.constant 0 : i32
    return %c0_i32, %arg0 : i32, i32
  }
  func.func @transform_1(%arg0: i32) -> (i32, i32) {
    %c0_i32 = arith.constant 0 : i32
    %c0_i32_0 = arith.constant 0 : i32
    %c0_i32_1 = arith.constant 0 : i32
    return %c0_i32, %c0_i32_0 : i32, i32
  }
  func.func @transform_2(%arg0: i32) -> (i32, i32) {
    %c0_i32 = arith.constant 0 : i32
    %c0_i32_0 = arith.constant 0 : i32
    %c0_i32_1 = arith.constant 0 : i32
    return %c0_i32, %c0_i32_0 : i32, i32
  }
  func.func @transform_3(%arg0: i32) -> (i32, i32) {
    %c0_i32 = arith.constant 0 : i32
    %c0_i32_0 = arith.constant 0 : i32
    %c0_i32_1 = arith.constant 0 : i32
    return %c0_i32, %c0_i32_0 : i32, i32
  }
  func.func @transform_4(%arg0: i32) -> (i32, i32) {
    %c0_i32 = arith.constant 0 : i32
    %c0_i32_0 = arith.constant 0 : i32
    return %c0_i32, %arg0 : i32, i32
  }
}

</mosaic_0001>

<bundles_post_ra>
// kernel: critic_forward.1
= control target key start
LH: loop header
LB: loop body
LE: loop exit
PB: predicated region body
PF: predicated region fallthrough
CT: control target
= control target key end

     0   :  { %v776_v1 = vmov 1   ;;  %v777_v2 = vmov 0   ;;  %v778_v4 = vmov 2   ;;  %s1186_s0 = inlined_call_operand.vmem [shape: f32[4,2], index: 0, kind: input, shape index: {}]   ;;  %s1187_s1 = inlined_call_operand.vmem [shape: f32[128,4], index: 1, kind: input, shape index: {}]   ;;  %s1188_s2 = inlined_call_operand.vmem [shape: f32[128,2], index: 2, kind: input, shape index: {}]   ;;  %s1189_s3 = inlined_call_operand.<no memory space> [shape: f32[1,1], index: 3, kind: input, shape index: {}]   ;;  %s1190_s4 = inlined_call_operand.hbm [shape: f32[1,2], index: 4, kind: output, shape index: {}]  }
   0x1   :  { %v20_v0 = vld [vmem:[%s1187_s1] sm:$0xff]  ;;  %690 = vset.pattern.permute.xlu1 %v776_v1  ;;  %689 = vset.pattern.permute.xlu0 %v777_v2  ;;  %v76_v5 = vld [vmem:[%s1188_s2 + $0x8] sm:$0xff] }
   0x2   :  { %39 = vperm.xlu1 %690, %v20_v0   ;;  %24 = vperm.xlu0 %689, %v20_v0   ;;  %v21_v3 = vld [vmem:[%s1188_s2] sm:$0xff] }
   0x6   :  { %691 = vset.pattern.permute.xlu1 %v778_v4  ;;  %34 = vperm.xlu0 %689, %v21_v3  }
   0x7   :  { %49 = vperm.xlu1 %691, %v20_v0  }
   0x8   :  { %10 = vsyncpa [#allocation4], 0  ;;  %v115_v6 = vld [vmem:[%s1188_s2 + $0x10] sm:$0xff]  ;;  %v75_v7 = vld [vmem:[%s1187_s1 + $0x8] sm:$0xff]  ;;  %v779_v20 = vmov 3   ;;  %v27_v31 = vlaneseq  ;;  %s780_s28 = smov [#allocation3]  }
   0x9   :  { %v154_v8 = vld [vmem:[%s1188_s2 + $0x18] sm:$0xff]  ;;  %v832_v9 = vld [vmem:[%s1188_s2 + $0x20] sm:$0xff]  ;;  %v839_v10 = vld [vmem:[%s1188_s2 + $0x28] sm:$0xff]  ;;  %s676_s29 = sshll.u32 %s780_s28, 4  ;;  %s677_s29 = int_to_ptr.vmem [resolvable:$true] %s676_s29 }
   0xa   :  { %85 = vperm.xlu0 %689, %v76_v5   ;;  %v846_v11 = vld [vmem:[%s1188_s2 + $0x30] sm:$0xff]  ;;  %v853_v12 = vld [vmem:[%s1188_s2 + $0x38] sm:$0xff]  ;;  %v862_v14 = vld [vmem:[%s1188_s2 + $0x40] sm:$0xff]  ;;  %v963_v32 = vshrl.u32 %v27_v31, 7  ;;  %s752_s30 = scalar_lea.vmem %s677_s29, 16  ;;  %s756_s5 = scalar_lea.vmem %s677_s29, 32 }
   0xb   :  { %692 = vset.pattern.permute.xlu1 %v776_v1  ;;  %v114_v13 = vld [vmem:[%s1187_s1 + $0x10] sm:$0xff]  ;;  %v869_v15 = vld [vmem:[%s1188_s2 + $0x48] sm:$0xff]  ;;  %v883_v17 = vld [vmem:[%s1188_s2 + $0x58] sm:$0xff]  ;;  %p753_p0 = scmp.ne.s32.totalorder %s677_s29, %s752_s30  ;;  %p757_p1 = scmp.lt.s32.totalorder %s677_s29, %s677_s29 }
   0xc   :  { %70 = vperm.xlu1 %692, %v21_v3   ;;  %v876_v16 = vld [vmem:[%s1188_s2 + $0x50] sm:$0xff]  ;;  %v890_v18 = vld [vmem:[%s1188_s2 + $0x68] sm:$0xff]  ;;  %v153_v19 = vld [vmem:[%s1187_s1 + $0x18] sm:$0xff]  ;;  %v29_v33 = vsub.s32 0, %v963_v32  ;;  %v44_v60 = vsub.s32 1, %v963_v32  ;;  %v54_v63 = vsub.s32 2, %v963_v32  ;;  %p758_p2 = scmp.lt.s32.totalorder %s756_s5, %s752_s30 }
   0xd   :  { %v192_v21 = vld [vmem:[%s1187_s1 + $0x20] sm:$0xff]  ;;  %v231_v22 = vld [vmem:[%s1187_s1 + $0x28] sm:$0xff]  ;;  %v270_v23 = vld [vmem:[%s1187_s1 + $0x30] sm:$0xff] }
   0xe   :  { %124 = vperm.xlu0 %689, %v115_v6   ;;  %v309_v24 = vld [vmem:[%s1187_s1 + $0x38] sm:$0xff]  ;;  %v919_v25 = vld [vmem:[%s1187_s1 + $0x40] sm:$0xff]  ;;  %v927_v26 = vld [vmem:[%s1187_s1 + $0x48] sm:$0xff]  ;;  %p759_p3 = por %p758_p2, %p757_p1 }
   0xf   :  { %v934_v27 = vld [vmem:[%s1187_s1 + $0x50] sm:$0xff]  ;;  %v940_v28 = vld [vmem:[%s1187_s1 + $0x58] sm:$0xff]  ;;  %v947_v29 = vld [vmem:[%s1187_s1 + $0x60] sm:$0xff] }
  0x10   :  { %693 = vset.pattern.permute.xlu1 %v777_v2  ;;  %v954_v30 = vld [vmem:[%s1187_s1 + $0x70] sm:$0xff]  ;;  %v971_v34 = vld [vmem:[%s1186_s0] sm:$0xf]  ;;  %v1002_v50 = vld [vmem:[%s1188_s2 + $0x78] sm:$0xff]  ;;  %p760_p4 = pnand %p759_p3, %p753_p0 }
  0x11   :  { %79 = vperm.xlu1 %693, %v75_v7   ;;  %v976_v35 = vrot.slane %v971_v34, %v29_v33  ;;  %v981_v36 = vld [vmem:[%s1188_s2 + $0x60] sm:$0xff] }
  0x12   :  { %163 = vperm.xlu0 %689, %v154_v8  }
  0x15   :  { %694 = vset.pattern.permute.xlu1 %v776_v1 }
  0x16   :  { %90 = vperm.xlu1 %694, %v75_v7   ;;  %202 = vperm.xlu0 %689, %v832_v9  }
  0x1a   :  { %695 = vset.pattern.permute.xlu1 %v778_v4  ;;  %241 = vperm.xlu0 %689, %v839_v10  }
  0x1b   :  { %96 = vperm.xlu1 %695, %v75_v7  }
  0x1e   :  { %280 = vperm.xlu0 %689, %v846_v11  }
  0x1f   :  { %696 = vset.pattern.permute.xlu1 %v776_v1 }
  0x20   :  { %109 = vperm.xlu1 %696, %v76_v5   ;;  %v1039_v5 = vrot.slane %v971_v34, %v54_v63 }
  0x22   :  { %319 = vperm.xlu0 %689, %v853_v12  }
  0x24   :  { %697 = vset.pattern.permute.xlu1 %v777_v2 }
  0x25   :  { %118 = vperm.xlu1 %697, %v114_v13  }
  0x26   :  { %358 = vperm.xlu0 %689, %v862_v14  }
  0x29   :  { %698 = vset.pattern.permute.xlu1 %v776_v1 }
  0x2a   :  { %129 = vperm.xlu1 %698, %v114_v13   ;;  %397 = vperm.xlu0 %689, %v869_v15  }
  0x2e   :  { %699 = vset.pattern.permute.xlu1 %v778_v4  ;;  %436 = vperm.xlu0 %689, %v876_v16  }
  0x2f   :  { %135 = vperm.xlu1 %699, %v114_v13  }
  0x32   :  { %475 = vperm.xlu0 %689, %v883_v17  }
  0x33   :  { %700 = vset.pattern.permute.xlu1 %v776_v1 }
  0x34   :  { %148 = vperm.xlu1 %700, %v115_v6  }
  0x36   :  { %553 = vperm.xlu0 %689, %v890_v18  }
  0x38   :  { %701 = vset.pattern.permute.xlu1 %v777_v2 }
  0x39   :  { %157 = vperm.xlu1 %701, %v153_v19  }
  0x3a   :  { %738 = vset.pattern.permute.xlu0 %v779_v20 }
  0x3b   :  { %59 = vperm.xlu0 %738, %v20_v0   ;;  %v1033_v0 = vrot.slane %v971_v34, %v44_v60 }
  0x3d   :  { %702 = vset.pattern.permute.xlu1 %v776_v1 }
  0x3e   :  { %168 = vperm.xlu1 %702, %v153_v19  }
  0x3f   :  { %102 = vperm.xlu0 %738, %v75_v7   ;;  %v64_v7 = vsub.s32 3, %v963_v32 }
  0x42   :  { %703 = vset.pattern.permute.xlu1 %v778_v4 }
  0x43   :  { %174 = vperm.xlu1 %703, %v153_v19   ;;  %141 = vperm.xlu0 %738, %v114_v13   ;;  %v1050_v13 = vrot.slane %v971_v34, %v64_v7 }
  0x47   :  { %704 = vset.pattern.permute.xlu1 %v776_v1  ;;  %180 = vperm.xlu0 %738, %v153_v19  }
  0x48   :  { %187 = vperm.xlu1 %704, %v154_v8  }
  0x4b   :  { %219 = vperm.xlu0 %738, %v192_v21  }
  0x4c   :  { %705 = vset.pattern.permute.xlu1 %v777_v2 }
  0x4d   :  { %196 = vperm.xlu1 %705, %v192_v21  }
  0x4f   :  { %258 = vperm.xlu0 %738, %v231_v22  }
  0x51   :  { %706 = vset.pattern.permute.xlu1 %v776_v1 }
  0x52   :  { %207 = vperm.xlu1 %706, %v192_v21  }
  0x53   :  { %297 = vperm.xlu0 %738, %v270_v23  }
  0x56   :  { %707 = vset.pattern.permute.xlu1 %v778_v4 }
  0x57   :  { %213 = vperm.xlu1 %707, %v192_v21   ;;  %336 = vperm.xlu0 %738, %v309_v24  }
  0x5b   :  { %708 = vset.pattern.permute.xlu1 %v776_v1  ;;  %375 = vperm.xlu0 %738, %v919_v25  }
  0x5c   :  { %226 = vperm.xlu1 %708, %v832_v9  }
  0x5f   :  { %414 = vperm.xlu0 %738, %v927_v26  }
  0x60   :  { %709 = vset.pattern.permute.xlu1 %v777_v2 }
  0x61   :  { %235 = vperm.xlu1 %709, %v231_v22  }
  0x63   :  { %453 = vperm.xlu0 %738, %v934_v27  }
  0x65   :  { %710 = vset.pattern.permute.xlu1 %v776_v1 }
  0x66   :  { %246 = vperm.xlu1 %710, %v231_v22  }
  0x67   :  { %492 = vperm.xlu0 %738, %v940_v28  }
  0x6a   :  { %711 = vset.pattern.permute.xlu1 %v778_v4 }
  0x6b   :  { %252 = vperm.xlu1 %711, %v231_v22   ;;  %531 = vperm.xlu0 %738, %v947_v29  }
  0x6f   :  { %712 = vset.pattern.permute.xlu1 %v776_v1  ;;  %744 = vset.pattern.permute.xlu0 %v778_v4 }
  0x70   :  { %265 = vperm.xlu1 %712, %v839_v10   ;;  %603 = vperm.xlu0 %744, %v954_v30  }
  0x74   :  { %713 = vset.pattern.permute.xlu1 %v777_v2  ;;  %745 = vset.pattern.permute.xlu0 %v776_v1 }
  0x75   :  { %274 = vperm.xlu1 %713, %v270_v23   ;;  %519 = vperm.xlu0 %745, %v947_v29  }
  0x79   :  { %714 = vset.pattern.permute.xlu1 %v776_v1  ;;  %597 = vperm.xlu0 %745, %v954_v30  }
  0x7a   :  { %285 = vperm.xlu1 %714, %v270_v23  }
  0x7d   :  { %499 = vperm.xlu0 %745, %v883_v17  }
  0x7e   :  { %715 = vset.pattern.permute.xlu1 %v778_v4 }
  0x7f   :  { %291 = vperm.xlu1 %715, %v270_v23  }
  0x81   :  { %v40_v37 = vpop.permute.xlu1 %39  ;;  %v25_v38 = vpop.permute.xlu0 %24  ;;  %538 = vperm.xlu0 %745, %v981_v36  }
  0x82   :  { %v31_v39 = vmul.f32 %v976_v35, %v25_v38  ;;  %v46_v8 = vmul.f32 %v1033_v0, %v40_v37 }
  0x83   :  { %716 = vset.pattern.permute.xlu1 %v776_v1 }
  0x84   :  { %304 = vperm.xlu1 %716, %v846_v11  }
  0x85   :  { %v35_v40 = vpop.permute.xlu0 %34  ;;  %577 = vperm.xlu0 %745, %v890_v18  }
  0x86   :  { %v37_v41 = vadd.f32 %v35_v40, %v31_v39  ;;  %v50_v42 = vpop.permute.xlu1 %49 }
  0x87   :  { %v56_v11 = vmul.f32 %v1039_v5, %v50_v42 }
  0x88   :  { %717 = vset.pattern.permute.xlu1 %v777_v2  ;;  %v47_v10 = vadd.f32 %v46_v8, %v37_v41 }
  0x89   :  { %313 = vperm.xlu1 %717, %v309_v24   ;;  %v86_v43 = vpop.permute.xlu0 %85  ;;  %655 = vperm.xlu0 %745, %v1002_v50  }
  0x8a   :  { %v57_v21 = vadd.f32 %v56_v11, %v47_v10 }
  0x8b   :  { %v989_v44 = vpop.permute.xlu1 %70 }
  0x8d   :  { %718 = vset.pattern.permute.xlu1 %v776_v1  ;;  %v992_v45 = vpop.permute.xlu0 %124 }
  0x8e   :  { %324 = vperm.xlu1 %718, %v309_v24  }
  0x90   :  { %v80_v46 = vpop.permute.xlu1 %79 }
  0x91   :  { %v994_v47 = vpop.permute.xlu0 %163 }
  0x92   :  { %719 = vset.pattern.permute.xlu1 %v778_v4 }
  0x93   :  { %330 = vperm.xlu1 %719, %v309_v24  }
  0x95   :  { %v91_v48 = vpop.permute.xlu1 %90  ;;  %v997_v49 = vpop.permute.xlu0 %202 }
  0x96   :  { %v93_v17 = vmul.f32 %v91_v48, %v1033_v0 }
  0x97   :  { %720 = vset.pattern.permute.xlu1 %v776_v1 }
  0x98   :  { %343 = vperm.xlu1 %720, %v853_v12   ;;  %v82_v12 = vmul.f32 %v80_v46, %v976_v35 }
  0x99   :  { %v1007_v51 = vpop.permute.xlu0 %241 }
  0x9a   :  { %v97_v52 = vpop.permute.xlu1 %96  ;;  %v88_v22 = vadd.f32 %v86_v43, %v82_v12 }
  0x9b   :  { %v99_v23 = vmul.f32 %v97_v52, %v1039_v5 }
  0x9c   :  { %721 = vset.pattern.permute.xlu1 %v777_v2  ;;  %v94_v31 = vadd.f32 %v93_v17, %v88_v22 }
  0x9d   :  { %352 = vperm.xlu1 %721, %v919_v25   ;;  %v1011_v53 = vpop.permute.xlu0 %280 }
  0x9e   :  { %v100_v40 = vadd.f32 %v99_v23, %v94_v31 }
  0x9f   :  { %v1013_v54 = vpop.permute.xlu1 %109 }
  0xa1   :  { %722 = vset.pattern.permute.xlu1 %v776_v1  ;;  %v1016_v55 = vpop.permute.xlu0 %319 }
  0xa2   :  { %363 = vperm.xlu1 %722, %v919_v25  }
  0xa4   :  { %v119_v56 = vpop.permute.xlu1 %118 }
  0xa5   :  { %v1019_v57 = vpop.permute.xlu0 %358  ;;  %v121_v18 = vmul.f32 %v119_v56, %v976_v35 }
  0xa6   :  { %723 = vset.pattern.permute.xlu1 %v778_v4 }
  0xa7   :  { %369 = vperm.xlu1 %723, %v919_v25   ;;  %v127_v37 = vadd.f32 %v992_v45, %v121_v18 }
  0xa9   :  { %v130_v58 = vpop.permute.xlu1 %129  ;;  %v1023_v59 = vpop.permute.xlu0 %397 }
  0xaa   :  { %v132_v25 = vmul.f32 %v130_v58, %v1033_v0 }
  0xab   :  { %724 = vset.pattern.permute.xlu1 %v776_v1 }
  0xac   :  { %382 = vperm.xlu1 %724, %v862_v14  }
  0xad   :  { %v1028_v61 = vpop.permute.xlu0 %436 }
  0xae   :  { %v136_v62 = vpop.permute.xlu1 %135 }
  0xaf   :  { %v138_v38 = vmul.f32 %v136_v62, %v1039_v5 }
  0xb0   :  { %725 = vset.pattern.permute.xlu1 %v777_v2 }
  0xb1   :  { %391 = vperm.xlu1 %725, %v927_v26   ;;  %v1036_v3 = vpop.permute.xlu0 %475 }
  0xb3   :  { %v149_v6 = vpop.permute.xlu1 %148 }
  0xb5   :  { %726 = vset.pattern.permute.xlu1 %v776_v1  ;;  %v1044_v9 = vpop.permute.xlu0 %553 }
  0xb6   :  { %402 = vperm.xlu1 %726, %v927_v26  }
  0xb8   :  { %v158_v14 = vpop.permute.xlu1 %157 }
  0xb9   :  { %v160_v32 = vmul.f32 %v158_v14, %v976_v35 }
  0xba   :  { %727 = vset.pattern.permute.xlu1 %v778_v4  ;;  %v60_v19 = vpop.permute.xlu0 %59 }
  0xbb   :  { %v66_v24 = vmul.f32 %v1050_v13, %v60_v19  ;;  %408 = vperm.xlu1 %727, %v927_v26   ;;  %v133_v26 = vadd.f32 %v132_v25, %v127_v37  ;;  %v166_v43 = vadd.f32 %v994_v47, %v160_v32 }
  0xbd   :  { %v67_v33 = vadd.f32 %v66_v24, %v57_v21  ;;  %v169_v34 = vpop.permute.xlu1 %168  ;;  %v139_v52 = vadd.f32 %v138_v38, %v133_v26 }
  0xbe   :  { %v103_v39 = vpop.permute.xlu0 %102  ;;  %v171_v41 = vmul.f32 %v169_v34, %v1033_v0 }
  0xbf   :  { %v105_v42 = vmul.f32 %v103_v39, %v1050_v13  ;;  %728 = vset.pattern.permute.xlu1 %v776_v1  ;;  %v68_v46 = vmax.f32 %v67_v33, 0.0 }
  0xc0   :  { %421 = vperm.xlu1 %728, %v869_v15   ;;  %v172_v58 = vadd.f32 %v171_v41, %v166_v43 }
  0xc1   :  { %v106_v48 = vadd.f32 %v105_v42, %v100_v40  ;;  %v73_v7 = vmul.f32 %v989_v44, %v68_v46 }
  0xc2   :  { %v175_v56 = vpop.permute.xlu1 %174  ;;  %v142_v45 = vpop.permute.xlu0 %141 }
  0xc3   :  { %v107_v60 = vmax.f32 %v106_v48, 0.0  ;;  %v177_v62 = vmul.f32 %v175_v56, %v1039_v5  ;;  %v144_v63 = vmul.f32 %v142_v45, %v1050_v13 }
  0xc4   :  { %729 = vset.pattern.permute.xlu1 %v777_v2 }
  0xc5   :  { %v112_v8 = vmul.f32 %v1013_v54, %v107_v60  ;;  %v178_v15 = vadd.f32 %v177_v62, %v172_v58  ;;  %v145_v10 = vadd.f32 %v144_v63, %v139_v52  ;;  %430 = vperm.xlu1 %729, %v934_v27  }
  0xc6   :  { %v181_v47 = vpop.permute.xlu0 %180 }
  0xc7   :  { %v146_v11 = vmax.f32 %v145_v10, 0.0  ;;  %v183_v12 = vmul.f32 %v181_v47, %v1050_v13  ;;  %v188_v14 = vpop.permute.xlu1 %187  ;;  %v113_v17 = vadd.f32 %v112_v8, %v73_v7 }
  0xc9   :  { %v151_v18 = vmul.f32 %v149_v6, %v146_v11  ;;  %v184_v19 = vadd.f32 %v183_v12, %v178_v15  ;;  %730 = vset.pattern.permute.xlu1 %v776_v1 }
  0xca   :  { %441 = vperm.xlu1 %730, %v934_v27   ;;  %v220_v33 = vpop.permute.xlu0 %219 }
  0xcb   :  { %v152_v21 = vadd.f32 %v151_v18, %v113_v17  ;;  %v185_v44 = vmax.f32 %v184_v19, 0.0  ;;  %v222_v38 = vmul.f32 %v220_v33, %v1050_v13 }
  0xcc   :  { %v197_v22 = vpop.permute.xlu1 %196 }
  0xcd   :  { %v190_v54 = vmul.f32 %v188_v14, %v185_v44  ;;  %v199_v23 = vmul.f32 %v197_v22, %v976_v35 }
  0xce   :  { %731 = vset.pattern.permute.xlu1 %v778_v4  ;;  %v259_v56 = vpop.permute.xlu0 %258 }
  0xcf   :  { %v191_v24 = vadd.f32 %v190_v54, %v152_v21  ;;  %v205_v25 = vadd.f32 %v997_v49, %v199_v23  ;;  %447 = vperm.xlu1 %731, %v934_v27   ;;  %v261_v60 = vmul.f32 %v259_v56, %v1050_v13  ;;  %v583_v54 = vld [vmem:[%s1188_s2 + $0x70] sm:$0xff] }
  0xd1   :  { %v208_v31 = vpop.permute.xlu1 %207 }
  0xd2   :  { %v210_v6 = vmul.f32 %v208_v31, %v1033_v0  ;;  %v298_v17 = vpop.permute.xlu0 %297 }
  0xd3   :  { %732 = vset.pattern.permute.xlu1 %v776_v1 }
  0xd4   :  { %v211_v32 = vadd.f32 %v210_v6, %v205_v25  ;;  %460 = vperm.xlu1 %732, %v876_v16   ;;  %v621_v6 = vld [vmem:[%s1187_s1 + $0x78] sm:$0xff] }
  0xd6   :  { %v214_v34 = vpop.permute.xlu1 %213 }
  0xd7   :  { %v216_v37 = vmul.f32 %v214_v34, %v1039_v5 }
  0xd8   :  { %733 = vset.pattern.permute.xlu1 %v777_v2 }
  0xd9   :  { %v217_v39 = vadd.f32 %v216_v37, %v211_v32  ;;  %469 = vperm.xlu1 %733, %v940_v28  }
  0xdb   :  { %v223_v27 = vadd.f32 %v222_v38, %v217_v39  ;;  %v227_v49 = vpop.permute.xlu1 %226  ;;  %v337_v38 = vpop.permute.xlu0 %336 }
  0xdd   :  { %v224_v40 = vmax.f32 %v223_v27, 0.0  ;;  %734 = vset.pattern.permute.xlu1 %v776_v1 }
  0xde   :  { %480 = vperm.xlu1 %734, %v940_v28  }
  0xdf   :  { %v229_v41 = vmul.f32 %v227_v49, %v224_v40  ;;  %v339_v49 = vmul.f32 %v337_v38, %v1050_v13  ;;  %v376_v56 = vpop.permute.xlu0 %375 }
  0xe0   :  { %v236_v16 = vpop.permute.xlu1 %235 }
  0xe1   :  { %v230_v42 = vadd.f32 %v229_v41, %v191_v24  ;;  %v238_v26 = vmul.f32 %v236_v16, %v976_v35 }
  0xe2   :  { %735 = vset.pattern.permute.xlu1 %v778_v4 }
  0xe3   :  { %486 = vperm.xlu1 %735, %v940_v28   ;;  %v244_v46 = vadd.f32 %v1007_v51, %v238_v26  ;;  %v543_v28 = vld [vmem:[%s1187_s1 + $0x68] sm:$0xff] }
  0xe5   :  { %v247_v43 = vpop.permute.xlu1 %246 }
  0xe6   :  { %v249_v48 = vmul.f32 %v247_v43, %v1033_v0 }
  0xe7   :  { %736 = vset.pattern.permute.xlu1 %v777_v2 }
  0xe8   :  { %v250_v52 = vadd.f32 %v249_v48, %v244_v46  ;;  %508 = vperm.xlu1 %736, %v947_v29  }
  0xea   :  { %v253_v45 = vpop.permute.xlu1 %252 }
  0xeb   :  { %v255_v58 = vmul.f32 %v253_v45, %v1039_v5 }
  0xec   :  { %514 = vperm.xlu1 %736, %v981_v36  }
  0xed   :  { %v256_v62 = vadd.f32 %v255_v58, %v250_v52 }
  0xef   :  { %v262_v51 = vadd.f32 %v261_v60, %v256_v62  ;;  %v266_v63 = vpop.permute.xlu1 %265  ;;  %v378_v60 = vmul.f32 %v376_v56, %v1050_v13 }
  0xf0   :  { %547 = vperm.xlu1 %736, %v543_v28  }
  0xf1   :  { %v263_v7 = vmax.f32 %v262_v51, 0.0 }
  0xf3   :  { %v268_v8 = vmul.f32 %v266_v63, %v263_v7 }
  0xf4   :  { %737 = vset.pattern.permute.xlu1 %v778_v4  ;;  %v275_v15 = vpop.permute.xlu1 %274 }
  0xf5   :  { %v269_v10 = vadd.f32 %v268_v8, %v230_v42  ;;  %525 = vperm.xlu1 %737, %v947_v29   ;;  %v277_v47 = vmul.f32 %v275_v15, %v976_v35  ;;  %v300_v29 = vmul.f32 %v298_v17, %v1050_v13 }
  0xf7   :  { %v283_v11 = vadd.f32 %v1011_v53, %v277_v47 }
  0xf9   :  { %739 = vset.pattern.permute.xlu1 %v776_v1  ;;  %v286_v36 = vpop.permute.xlu1 %285 }
  0xfa   :  { %v288_v12 = vmul.f32 %v286_v36, %v1033_v0  ;;  %558 = vperm.xlu1 %739, %v543_v28   ;;  %v415_v36 = vpop.permute.xlu0 %414 }
  0xfc   :  { %v289_v14 = vadd.f32 %v288_v12, %v283_v11  ;;  %v417_v12 = vmul.f32 %v415_v36, %v1050_v13 }
  0xfe   :  { %740 = vset.pattern.permute.xlu1 %v777_v2  ;;  %v292_v18 = vpop.permute.xlu1 %291 }
  0xff   :  { %v294_v19 = vmul.f32 %v292_v18, %v1039_v5  ;;  %586 = vperm.xlu1 %740, %v954_v30  }
 0x101   :  { %v295_v21 = vadd.f32 %v294_v19, %v289_v14 }
 0x103   :  { %v301_v44 = vadd.f32 %v300_v29, %v295_v21  ;;  %741 = vset.pattern.permute.xlu1 %v778_v4  ;;  %v305_v22 = vpop.permute.xlu1 %304 }
 0x104   :  { %564 = vperm.xlu1 %741, %v543_v28  }
 0x105   :  { %v302_v53 = vmax.f32 %v301_v44, 0.0 }
 0x107   :  { %v307_v23 = vmul.f32 %v305_v22, %v302_v53  ;;  %v454_v22 = vpop.permute.xlu0 %453 }
 0x108   :  { %742 = vset.pattern.permute.xlu1 %v777_v2  ;;  %v314_v24 = vpop.permute.xlu1 %313 }
 0x109   :  { %v308_v25 = vadd.f32 %v307_v23, %v269_v10  ;;  %592 = vperm.xlu1 %742, %v583_v54   ;;  %v316_v31 = vmul.f32 %v314_v24, %v976_v35 }
 0x10b   :  { %v322_v33 = vadd.f32 %v1016_v55, %v316_v31  ;;  %v493_v23 = vpop.permute.xlu0 %492 }
 0x10d   :  { %625 = vperm.xlu1 %742, %v621_v6   ;;  %v325_v32 = vpop.permute.xlu1 %324 }
 0x10e   :  { %v327_v34 = vmul.f32 %v325_v32, %v1033_v0 }
 0x10f   :  { %v532_v32 = vpop.permute.xlu0 %531 }
 0x110   :  { %v328_v37 = vadd.f32 %v327_v34, %v322_v33 }
 0x111   :  { %743 = vset.pattern.permute.xlu1 %v779_v20 }
 0x112   :  { %570 = vperm.xlu1 %743, %v543_v28   ;;  %v331_v39 = vpop.permute.xlu1 %330 }
 0x113   :  { %v333_v27 = vmul.f32 %v331_v39, %v1039_v5  ;;  %v604_v39 = vpop.permute.xlu0 %603 }
 0x115   :  { %v334_v40 = vadd.f32 %v333_v27, %v328_v37 }
 0x116   :  { %746 = vset.pattern.permute.xlu1 %v777_v2 }
 0x117   :  { %v340_v41 = vadd.f32 %v339_v49, %v334_v40  ;;  %631 = vperm.xlu1 %746, %v1002_v50   ;;  %v344_v16 = vpop.permute.xlu1 %343 }
 0x119   :  { %v341_v55 = vmax.f32 %v340_v41, 0.0  ;;  %v520_v41 = vpop.permute.xlu0 %519 }
 0x11b   :  { %v346_v42 = vmul.f32 %v344_v16, %v341_v55  ;;  %747 = vset.pattern.permute.xlu1 %v776_v1 }
 0x11c   :  { %636 = vperm.xlu1 %747, %v621_v6   ;;  %v353_v26 = vpop.permute.xlu1 %352 }
 0x11d   :  { %v347_v43 = vadd.f32 %v346_v42, %v308_v25  ;;  %v355_v46 = vmul.f32 %v353_v26, %v976_v35 }
 0x11f   :  { %v361_v2 = vadd.f32 %v1019_v57, %v355_v46  ;;  %v495_v46 = vmul.f32 %v493_v23, %v1050_v13 }
 0x120   :  { %748 = vset.pattern.permute.xlu1 %v779_v20 }
 0x121   :  { %609 = vperm.xlu1 %748, %v954_v30   ;;  %v364_v48 = vpop.permute.xlu1 %363 }
 0x122   :  { %v366_v52 = vmul.f32 %v364_v48, %v1033_v0 }
 0x124   :  { %v367_v50 = vadd.f32 %v366_v52, %v361_v2 }
 0x125   :  { %749 = vset.pattern.permute.xlu1 %v778_v4 }
 0x126   :  { %642 = vperm.xlu1 %749, %v621_v6   ;;  %v370_v45 = vpop.permute.xlu1 %369 }
 0x127   :  { %v372_v58 = vmul.f32 %v370_v45, %v1039_v5 }
 0x129   :  { %v373_v62 = vadd.f32 %v372_v58, %v367_v50 }
 0x12a   :  { %750 = vset.pattern.permute.xlu1 %v779_v20 }
 0x12b   :  { %v379_v28 = vadd.f32 %v378_v60, %v373_v62  ;;  %648 = vperm.xlu1 %750, %v621_v6   ;;  %v383_v30 = vpop.permute.xlu1 %382  ;;  %v456_v6 = vmul.f32 %v454_v22, %v1050_v13 }
 0x12d   :  { %v380_v51 = vmax.f32 %v379_v28, 0.0 }
 0x12f   :  { %v385_v57 = vmul.f32 %v383_v30, %v380_v51  ;;  %751 = vset.pattern.permute.xlu1 %v776_v1 }
 0x130   :  { %616 = vperm.xlu1 %751, %v583_v54   ;;  %v392_v63 = vpop.permute.xlu1 %391 }
 0x131   :  { %v386_v7 = vadd.f32 %v385_v57, %v347_v43  ;;  %v394_v4 = vmul.f32 %v392_v63, %v976_v35  ;;  %v598_v43 = vpop.permute.xlu0 %597 }
 0x133   :  { %v400_v15 = vadd.f32 %v1023_v59, %v394_v4 }
 0x135   :  { %v403_v8 = vpop.permute.xlu1 %402  ;;  %v500_v45 = vpop.permute.xlu0 %499 }
 0x136   :  { %v405_v10 = vmul.f32 %v403_v8, %v1033_v0 }
 0x138   :  { %v406_v47 = vadd.f32 %v405_v10, %v400_v15 }
 0x13a   :  { %v409_v20 = vpop.permute.xlu1 %408 }
 0x13b   :  { %v411_v11 = vmul.f32 %v409_v20, %v1039_v5  ;;  %v534_v20 = vmul.f32 %v532_v32, %v1050_v13 }
 0x13d   :  { %v412_v14 = vadd.f32 %v411_v11, %v406_v47 }
 0x13f   :  { %v418_v17 = vadd.f32 %v417_v12, %v412_v14  ;;  %v422_v1 = vpop.permute.xlu1 %421 }
 0x141   :  { %v419_v18 = vmax.f32 %v418_v17, 0.0 }
 0x143   :  { %v424_v19 = vmul.f32 %v422_v1, %v419_v18 }
 0x144   :  { %v431_v29 = vpop.permute.xlu1 %430 }
 0x145   :  { %v425_v21 = vadd.f32 %v424_v19, %v386_v7  ;;  %v433_v44 = vmul.f32 %v431_v29, %v976_v35  ;;  %v522_v7 = vmul.f32 %v520_v41, %v1033_v0 }
 0x147   :  { %v439_v53 = vadd.f32 %v1028_v61, %v433_v44 }
 0x149   :  { %v442_v59 = vpop.permute.xlu1 %441 }
 0x14a   :  { %v444_v54 = vmul.f32 %v442_v59, %v1033_v0 }
 0x14c   :  { %v445_v24 = vadd.f32 %v444_v54, %v439_v53 }
 0x14e   :  { %v448_v25 = vpop.permute.xlu1 %447 }
 0x14f   :  { %v450_v31 = vmul.f32 %v448_v25, %v1039_v5 }
 0x151   :  { %v451_v33 = vadd.f32 %v450_v31, %v445_v24 }
 0x153   :  { %v457_v34 = vadd.f32 %v456_v6, %v451_v33  ;;  %v461_v37 = vpop.permute.xlu1 %460 }
 0x155   :  { %v458_v38 = vmax.f32 %v457_v34, 0.0  ;;  %v600_v34 = vmul.f32 %v598_v43, %v1033_v0 }
 0x157   :  { %v463_v27 = vmul.f32 %v461_v37, %v458_v38 }
 0x158   :  { %v470_v49 = vpop.permute.xlu1 %469 }
 0x159   :  { %v464_v40 = vadd.f32 %v463_v27, %v425_v21  ;;  %v472_v61 = vmul.f32 %v470_v49, %v976_v35  ;;  %v539_v21 = vpop.permute.xlu0 %538  ;;  %v606_v27 = vmul.f32 %v604_v39, %v1039_v5 }
 0x15b   :  { %v478_v42 = vadd.f32 %v1036_v3, %v472_v61 }
 0x15d   :  { %v481_v16 = vpop.permute.xlu1 %480  ;;  %v578_v23 = vpop.permute.xlu0 %577 }
 0x15e   :  { %v483_v55 = vmul.f32 %v481_v16, %v1033_v0 }
 0x160   :  { %v484_v48 = vadd.f32 %v483_v55, %v478_v42 }
 0x162   :  { %v487_v26 = vpop.permute.xlu1 %486 }
 0x163   :  { %v489_v2 = vmul.f32 %v487_v26, %v1039_v5 }
 0x165   :  { %v490_v52 = vadd.f32 %v489_v2, %v484_v48 }
 0x167   :  { %v509_v50 = vpop.permute.xlu1 %508  ;;  %v496_v56 = vadd.f32 %v495_v46, %v490_v52 }
 0x168   :  { %v511_v3 = vmul.f32 %v509_v50, %v976_v35 }
 0x169   :  { %v497_v58 = vmax.f32 %v496_v56, 0.0 }
 0x16b   :  { %v502_v60 = vmul.f32 %v500_v45, %v497_v58  ;;  %v515_v62 = vpop.permute.xlu1 %514 }
 0x16c   :  { %v517_v4 = vadd.f32 %v515_v62, %v511_v3 }
 0x16d   :  { %v503_v28 = vadd.f32 %v502_v60, %v464_v40 }
 0x16e   :  { %v523_v10 = vadd.f32 %v522_v7, %v517_v4 }
 0x16f   :  { %v548_v30 = vpop.permute.xlu1 %547 }
 0x170   :  { %v550_v11 = vmul.f32 %v548_v30, %v976_v35 }
 0x172   :  { %v556_v1 = vadd.f32 %v1044_v9, %v550_v11 }
 0x174   :  { %v526_v51 = vpop.permute.xlu1 %525 }
 0x175   :  { %v528_v15 = vmul.f32 %v526_v51, %v1039_v5 }
 0x177   :  { %v529_v47 = vadd.f32 %v528_v15, %v523_v10 }
 0x179   :  { %v559_v57 = vpop.permute.xlu1 %558  ;;  %v535_v14 = vadd.f32 %v534_v20, %v529_v47 }
 0x17a   :  { %v561_v12 = vmul.f32 %v559_v57, %v1033_v0 }
 0x17b   :  { %v536_v29 = vmax.f32 %v535_v14, 0.0 }
 0x17c   :  { %v562_v19 = vadd.f32 %v561_v12, %v556_v1 }
 0x17d   :  { %v541_v53 = vmul.f32 %v539_v21, %v536_v29 }
 0x17e   :  { %v587_v63 = vpop.permute.xlu1 %586 }
 0x17f   :  { %v542_v31 = vadd.f32 %v541_v53, %v503_v28  ;;  %v589_v9 = vmul.f32 %v587_v63, %v976_v35  ;;  %v667_v63 = vstv %s1189_s3 }
 0x183   :  { %v565_v8 = vpop.permute.xlu1 %564 }
 0x184   :  { %v567_v18 = vmul.f32 %v565_v8, %v1039_v5 }
 0x186   :  { %v568_v22 = vadd.f32 %v567_v18, %v562_v19 }
 0x188   :  { %v593_v36 = vpop.permute.xlu1 %592 }
 0x189   :  { %v595_v37 = vadd.f32 %v593_v36, %v589_v9 }
 0x18b   :  { %v601_v49 = vadd.f32 %v600_v34, %v595_v37 }
 0x18c   :  { %v626_v17 = vpop.permute.xlu1 %625 }
 0x18d   :  { %v628_v40 = vmul.f32 %v626_v17, %v976_v35  ;;  %v607_v26 = vadd.f32 %v606_v27, %v601_v49  ;;  %v656_v35 = vpop.permute.xlu0 %655 }
 0x191   :  { %v571_v44 = vpop.permute.xlu1 %570 }
 0x192   :  { %v573_v59 = vmul.f32 %v571_v44, %v1050_v13 }
 0x194   :  { %v574_v54 = vadd.f32 %v573_v59, %v568_v22 }
 0x196   :  { %v632_v24 = vpop.permute.xlu1 %631  ;;  %v575_v25 = vmax.f32 %v574_v54, 0.0 }
 0x197   :  { %v634_v55 = vadd.f32 %v632_v24, %v628_v40 }
 0x198   :  { %v580_v6 = vmul.f32 %v578_v23, %v575_v25 }
 0x19a   :  { %v581_v32 = vadd.f32 %v580_v6, %v542_v31 }
 0x19b   :  { %v637_v33 = vpop.permute.xlu1 %636 }
 0x19c   :  { %v639_v41 = vmul.f32 %v637_v33, %v1033_v0 }
 0x19e   :  { %v640_v46 = vadd.f32 %v639_v41, %v634_v55 }
 0x1a0   :  { %v610_v38 = vpop.permute.xlu1 %609 }
 0x1a1   :  { %v612_v16 = vmul.f32 %v610_v38, %v1050_v13 }
 0x1a3   :  { %v613_v48 = vadd.f32 %v612_v16, %v607_v26 }
 0x1a5   :  { %v643_v61 = vpop.permute.xlu1 %642  ;;  %v614_v39 = vmax.f32 %v613_v48, 0.0 }
 0x1a6   :  { %v645_v42 = vmul.f32 %v643_v61, %v1039_v5 }
 0x1a8   :  { %v646_v43 = vadd.f32 %v645_v42, %v640_v46 }
 0x1aa   :  { %v649_v2 = vpop.permute.xlu1 %648 }
 0x1ab   :  { %v651_v52 = vmul.f32 %v649_v2, %v1050_v13 }
 0x1ad   :  { %v652_v50 = vadd.f32 %v651_v52, %v646_v43 }
 0x1af   :  { %v653_v56 = vmax.f32 %v652_v50, 0.0  ;;  %v617_v45 = vpop.permute.xlu1 %616 }
 0x1b0   :  { %v619_v58 = vmul.f32 %v617_v45, %v614_v39 }
 0x1b1   :  { %v658_v0 = vmul.f32 %v656_v35, %v653_v56 }
 0x1b2   :  { %v620_v60 = vadd.f32 %v619_v58, %v581_v32 }
 0x1b4   :  { %v659_v62 = vadd.f32 %v658_v0, %v620_v60 }
 0x1b6   :  { %v660_v28 = vrot.slane %v659_v62, 4 }
 0x1b8   :  { %v661_v30 = vadd.f32 %v660_v28, %v659_v62 }
 0x1ba   :  { %v662_v51 = vrot.slane %v661_v30, 2 }
 0x1bc   :  { %v663_v5 = vadd.f32 %v662_v51, %v661_v30 }
 0x1be   :  { %v664_v57 = vrot.slane %v663_v5, 1 }
 0x1c0   :  { %v665_v13 = vadd.f32 %v664_v57, %v663_v5 }
 0x1c2   :  { %v668_v3 = vadd.f32 %v667_v63, %v665_v13 }
 0x1c4   :  { %669 = vst [vmem:[#allocation3] sm:$0x1] %v668_v3 }
 0x1c5   :  { %763 = shalt.err (!%p760_p4)
}
 0x1c6   :  { %s764_s8 = scalar_lea.hbm %s1190_s4, 16 }
 0x1c7   :  { %p765_p5 = scmp.ne.s32.totalorder %s1190_s4, %s764_s8  ;;  %p768_p6 = scmp.lt.u32.totalorder %s764_s8, %s1190_s4 }
 0x1c9   :  { %p770_p7 = pnand %p768_p6, %p765_p5 }
 0x1cb   :  { %773 = shalt.err (!%p770_p7)
}
 0x1cc   :  { %679 = dma.vmem_to_hbm [thread:$0]  %s677_s29, 16, %s1190_s4, [#allocation4]  }
 0x1cd   :  { %774 = dma.done.wait [#allocation4], 16  }
 0x1ce   :  { %775 = vsyncadd [#allocation4], 4294967280 }
 0x1cf   :  { %683 = vsyncpa [#allocation4], 1 }

</bundles_post_ra>
